<compile_context>
chip_gen: v7x
topology: tpu7x:2x2x1
jax: 0.10.0
libtpu: 0.0.40
codegen_flags: <defaults>
</compile_context>

<pallas_src>
import functools

import jax
import jax.numpy as jnp
from jax import lax
from jax.experimental import pallas as pl
from jax.experimental.pallas import tpu as pltpu


def _round_up(x, m):
    return (x + m - 1) // m * m


def _conv_out(x, k, s):
    return (x - k) // s + 1


# ----------------------------------------------------------------------------
# Fused Pallas kernel: conv1 -> relu -> conv2 -> relu -> fc1 -> relu -> fc2
# All intermediates are laid out as (spatial..., batch_tile=8, channels) so the
# sublane dim is always 8 and every reshape is layout-trivial.
# ----------------------------------------------------------------------------
def _dqn_fused_kernel(xd_ref, w1_ref, b1_ref, w2_ref, b2_ref,
                      wf1_ref, bf1_ref, wf2_ref, bf2_ref, out_ref,
                      *, oh1, ow1, oh2, ow2):
    bt = xd_ref.shape[2]            # batch tile (8) == sublane dim everywhere
    kc1 = xd_ref.shape[3]           # 16 * C_in  (space-to-depth(4) channels)

    # ---- conv1 (8x8, stride 4) == 2x2/stride-1 conv on the s2d(4) input ----
    m1 = oh1 * ow1 * bt
    acc1 = jnp.zeros((m1, 16), jnp.float32)
    for di in range(2):
        for dj in range(2):
            xs = xd_ref[di:di + oh1, dj:dj + ow1, :, :]     # (OH1, OW1, bt, kc1)
            acc1 = acc1 + jnp.dot(xs.reshape(m1, kc1), w1_ref[2 * di + dj],
                                  preferred_element_type=jnp.float32)
    a1 = jnp.maximum(acc1 + b1_ref[...], 0.0).astype(jnp.bfloat16)
    a1 = a1.reshape(oh1, ow1, bt, 16)

    # parity-split the spatial dims (leading-dim reshape only) so the stride-2
    # conv2 needs nothing but contiguous slices.
    qh, qw = oh1 // 2, ow1 // 2
    y1 = a1[:2 * qh, :2 * qw].reshape(qh, 2, qw, 2, bt, 16)

    # ---- conv2 (4x4, stride 2) ----
    m2 = oh2 * ow2 * bt
    acc2 = jnp.zeros((m2, 32), jnp.float32)
    for i2 in range(4):
        di, ph = i2 // 2, i2 % 2
        for j2 in range(4):
            dj, pw = j2 // 2, j2 % 2
            ys = y1[di:di + oh2, ph, dj:dj + ow2, pw, :, :]  # (OH2, OW2, bt, 16)
            acc2 = acc2 + jnp.dot(ys.reshape(m2, 16), w2_ref[i2, j2],
                                  preferred_element_type=jnp.float32)
    a2 = jnp.maximum(acc2 + b2_ref[...], 0.0).astype(jnp.bfloat16)
    a2 = a2.reshape(oh2, ow2, bt, 32)

    # ---- flatten + fc1 (PyTorch (c,h,w) flatten order folded into wf1 prep) ----
    acc3 = jnp.zeros((bt, 256), jnp.float32)
    for hh in range(oh2):
        for ww in range(ow2):
            acc3 = acc3 + jnp.dot(a2[hh, ww], wf1_ref[hh, ww],
                                  preferred_element_type=jnp.float32)
    h1 = jnp.maximum(acc3 + bf1_ref[...], 0.0).astype(jnp.bfloat16)

    # ---- fc2 (lane-padded to 128 -> full unmasked store) ----
    y = jnp.dot(h1, wf2_ref[...], preferred_element_type=jnp.float32)
    out_ref[...] = (y + bf2_ref[...]).astype(out_ref.dtype)


# ----------------------------------------------------------------------------
# Parameters (PyTorch layout) + one-time conversion to the kernel layout
# ----------------------------------------------------------------------------
def init_pytorch_params(key, input_dims, n_actions):
    """PyTorch layouts: Conv2d (OC, C, KH, KW), Linear (out, in)."""
    c, h, w = input_dims
    keys = jax.random.split(key, 8)

    def u(k, shape, fan_in):
        bound = 1.0 / jnp.sqrt(fan_in)
        return jax.random.uniform(k, shape, jnp.float32, -bound, bound)

    oh1, ow1 = _conv_out(h, 8, 4), _conv_out(w, 8, 4)
    oh2, ow2 = _conv_out(oh1, 4, 2), _conv_out(ow1, 4, 2)
    fc_in = 32 * oh2 * ow2
    return dict(
        conv1_w=u(keys[0], (16, c, 8, 8), c * 8 * 8),
        conv1_b=u(keys[1], (16,), c * 8 * 8),
        conv2_w=u(keys[2], (32, 16, 4, 4), 16 * 4 * 4),
        conv2_b=u(keys[3], (32,), 16 * 4 * 4),
        fc1_w=u(keys[4], (256, fc_in), fc_in),
        fc1_b=u(keys[5], (256,), fc_in),
        fc2_w=u(keys[6], (n_actions, 256), 256),
        fc2_b=u(keys[7], (n_actions,), 256),
    )


def prepare_kernel_params(pt, input_dims):
    """One-time conversion: bf16 weights, f32 biases, kernel-friendly layouts."""
    c, h, w = input_dims
    oh1, ow1 = _conv_out(h, 8, 4), _conv_out(w, 8, 4)
    oh2, ow2 = _conv_out(oh1, 4, 2), _conv_out(ow1, 4, 2)
    n_actions = pt["fc2_w"].shape[0]
    n_pad = _round_up(max(n_actions, 128), 128)

    kp = {}
    # conv1: (o, c, i, j) with i = 4*di + hh, j = 4*dj + ww  ->  (2*di+dj, (hh,ww,c), o)
    w1 = pt["conv1_w"].reshape(16, c, 2, 4, 2, 4)       # (o, c, di, hh, dj, ww)
    w1 = w1.transpose(2, 4, 3, 5, 1, 0)                 # (di, dj, hh, ww, c, o)
    kp["conv1_w"] = w1.reshape(4, 16 * c, 16).astype(jnp.bfloat16)
    kp["conv1_b"] = pt["conv1_b"].reshape(1, 16).astype(jnp.float32)
    # conv2: (o, c, i, j) -> (i, j, c, o)
    kp["conv2_w"] = pt["conv2_w"].transpose(2, 3, 1, 0).astype(jnp.bfloat16)
    kp["conv2_b"] = pt["conv2_b"].reshape(1, 32).astype(jnp.float32)
    # fc1: PyTorch flattens (c, h, w) -> per-position (h, w) chunks of (c, out)
    f1 = pt["fc1_w"].reshape(256, 32, oh2, ow2).transpose(2, 3, 1, 0)
    kp["fc1_w"] = f1.astype(jnp.bfloat16)               # (OH2, OW2, 32, 256)
    kp["fc1_b"] = pt["fc1_b"].reshape(1, 256).astype(jnp.float32)
    # fc2: lane-pad n_actions -> 128 with zeros (sliced off outside the kernel)
    kp["fc2_w"] = jnp.pad(pt["fc2_w"].T,
                          ((0, 0), (0, n_pad - n_actions))).astype(jnp.bfloat16)
    kp["fc2_b"] = jnp.pad(pt["fc2_b"],
                          (0, n_pad - n_actions)).reshape(1, n_pad).astype(jnp.float32)
    return kp


# ----------------------------------------------------------------------------
# Forward pass (one pallas_call) + pure-JAX reference
# ----------------------------------------------------------------------------
@functools.partial(jax.jit, static_argnames=("n_actions",))
def deep_q_forward(kp, x_nchw, *, n_actions):
    n, c, h, w = x_nchw.shape
    oh1, ow1 = _conv_out(h, 8, 4), _conv_out(w, 8, 4)
    oh2, ow2 = _conv_out(oh1, 4, 2), _conv_out(ow1, 4, 2)
    assert oh2 >= 1 and ow2 >= 1, "input spatial dims too small for the two convs"
    hd, wd = oh1 + 1, ow1 + 1           # number of 4x4 spatial blocks the kernel reads
    npo = kp["fc2_w"].shape[1]          # lane-padded logits width (128)
    bt = 8                              # batch tile == sublane dim
    npad = _round_up(max(n, bt), bt)

    # Input prep (ONE XLA pass over the small input, replacing the old NCHW->NHWC
    # transpose): crop unused rows/cols, bf16 cast, space-to-depth(4), and put the
    # batch dim third so it becomes the sublane dim of the kernel block.
    xb = x_nchw.astype(jnp.bfloat16)[:, :, :4 * hd, :4 * wd]
    if npad != n:
        xb = jnp.pad(xb, ((0, npad - n), (0, 0), (0, 0), (0, 0)))
    xd = xb.reshape(npad, c, hd, 4, wd, 4).transpose(2, 4, 0, 3, 5, 1)
    xd = xd.reshape(hd, wd, npad, 16 * c)          # (Hd, Wd, N, (hh, ww, c))

    grid = (npad // bt,)
    kernel = functools.partial(_dqn_fused_kernel, oh1=oh1, ow1=ow1, oh2=oh2, ow2=ow2)

    fc_in = oh2 * ow2 * 32
    flops = 2 * npad * (oh1 * ow1 * (64 * c) * 16
                        + oh2 * ow2 * 256 * 32
                        + fc_in * 256
                        + 256 * npo)
    param_bytes = sum(int(v.size) * v.dtype.itemsize for v in kp.values())
    bytes_accessed = int(xd.size) * 2 + param_bytes + npad * npo * 4

    out = pl.pallas_call(
        kernel,
        out_shape=jax.ShapeDtypeStruct((npad, npo), jnp.float32),
        grid=grid,
        in_specs=[
            pl.BlockSpec((hd, wd, bt, 16 * c), lambda b: (0, 0, b, 0)),   # batch tile
            pl.BlockSpec((4, 16 * c, 16), lambda b: (0, 0, 0)),           # conv1 w (resident)
            pl.BlockSpec((1, 16), lambda b: (0, 0)),
            pl.BlockSpec((4, 4, 16, 32), lambda b: (0, 0, 0, 0)),         # conv2 w
            pl.BlockSpec((1, 32), lambda b: (0, 0)),
            pl.BlockSpec((oh2, ow2, 32, 256), lambda b: (0, 0, 0, 0)),    # fc1 w
            pl.BlockSpec((1, 256), lambda b: (0, 0)),
            pl.BlockSpec((256, npo), lambda b: (0, 0)),                   # fc2 w
            pl.BlockSpec((1, npo), lambda b: (0, 0)),
        ],
        out_specs=pl.BlockSpec((bt, npo), lambda b: (b, 0)),
        compiler_params=pltpu.CompilerParams(
            dimension_semantics=("parallel",),          # batch tiles -> both v7x cores
            vmem_limit_bytes=32 * 1024 * 1024),         # far under v7x's 64 MiB
        cost_estimate=pl.CostEstimate(flops=flops, transcendentals=0,
                                      bytes_accessed=bytes_accessed),
    )(xd, kp["conv1_w"], kp["conv1_b"], kp["conv2_w"], kp["conv2_b"],
      kp["fc1_w"], kp["fc1_b"], kp["fc2_w"], kp["fc2_b"])
    return out[:n, :n_actions]


def reference_forward(pt, x_nchw):
    """Pure-JAX f32 replica of the PyTorch module (NCHW semantics)."""
    dn = ("NCHW", "OIHW", "NCHW")
    y = lax.conv_general_dilated(x_nchw, pt["conv1_w"], (4, 4), "VALID",
                                 dimension_numbers=dn)
    y = jax.nn.relu(y + pt["conv1_b"][None, :, None, None])
    y = lax.conv_general_dilated(y, pt["conv2_w"], (2, 2), "VALID",
                                 dimension_numbers=dn)
    y = jax.nn.relu(y + pt["conv2_b"][None, :, None, None])
    y = y.reshape(y.shape[0], -1)
    y = jax.nn.relu(y @ pt["fc1_w"].T + pt["fc1_b"])
    return y @ pt["fc2_w"].T + pt["fc2_b"]


if __name__ == "__main__":
    # conv1(k=8,s=4) then conv2(k=4,s=2) need H,W >= 20; use 32x32.  batch=16 so
    # the single fused call has 2 "parallel" grid steps (both v7x TensorCores).
    batch, input_dims, n_actions = 16, (4, 32, 32), 6

    key = jax.random.PRNGKey(0)
    pkey, xkey = jax.random.split(key)
    pt_params = init_pytorch_params(pkey, input_dims, n_actions)
    kparams = prepare_kernel_params(pt_params, input_dims)
    x = jax.random.normal(xkey, (batch, *input_dims), dtype=jnp.float32)

    out = jax.block_until_ready(deep_q_forward(kparams, x, n_actions=n_actions))
    assert out.shape == (batch, n_actions), out.shape

    ref = reference_forward(pt_params, x)
    assert bool(jnp.all(jnp.isfinite(out)))
    assert bool(jnp.allclose(out, ref, rtol=5e-2, atol=3e-2)), \
        float(jnp.max(jnp.abs(out - ref)))
    print("KERNEL_OK")
</pallas_src>

<mosaic_0001>
module attributes {stable_mosaic.version = 11 : i64} {
  func.func @_dqn_fused_kernel(%arg0: i32, %arg1: memref<8x8x8x64xbf16, #tpu.memory_space<vmem>>, %arg2: memref<4x64x16xbf16, #tpu.memory_space<vmem>>, %arg3: memref<1x16xf32, #tpu.memory_space<vmem>>, %arg4: memref<4x4x16x32xbf16, #tpu.memory_space<vmem>>, %arg5: memref<1x32xf32, #tpu.memory_space<vmem>>, %arg6: memref<2x2x32x256xbf16, #tpu.memory_space<vmem>>, %arg7: memref<1x256xf32, #tpu.memory_space<vmem>>, %arg8: memref<256x128xbf16, #tpu.memory_space<vmem>>, %arg9: memref<1x128xf32, #tpu.memory_space<vmem>>, %arg10: memref<8x128xf32, #tpu.memory_space<vmem>>) attributes {dimension_semantics = [#tpu.dimension_semantics<parallel>], iteration_bounds = array<i64: 2>, scalar_prefetch = 0 : i64, scratch_operands = 0 : i64, tpu.core_type = #tpu.core_type<tc>, window_params = [{transform_indices = @transform_0, window_bounds = array<i64: 8, 8, 8, 64>}, {pipeline_mode = #tpu.pipeline_mode<synchronous>, transform_indices = @transform_1, window_bounds = array<i64: 4, 64, 16>}, {pipeline_mode = #tpu.pipeline_mode<synchronous>, transform_indices = @transform_2, window_bounds = array<i64: 1, 16>}, {pipeline_mode = #tpu.pipeline_mode<synchronous>, transform_indices = @transform_3, window_bounds = array<i64: 4, 4, 16, 32>}, {pipeline_mode = #tpu.pipeline_mode<synchronous>, transform_indices = @transform_4, window_bounds = array<i64: 1, 32>}, {pipeline_mode = #tpu.pipeline_mode<synchronous>, transform_indices = @transform_5, window_bounds = array<i64: 2, 2, 32, 256>}, {pipeline_mode = #tpu.pipeline_mode<synchronous>, transform_indices = @transform_6, window_bounds = array<i64: 1, 256>}, {pipeline_mode = #tpu.pipeline_mode<synchronous>, transform_indices = @transform_7, window_bounds = array<i64: 256, 128>}, {pipeline_mode = #tpu.pipeline_mode<synchronous>, transform_indices = @transform_8, window_bounds = array<i64: 1, 128>}, {transform_indices = @transform_9, window_bounds = array<i64: 8, 128>}]} {
    %cst = arith.constant 0.000000e+00 : f32
    %0 = vector.broadcast %cst : f32 to vector<392x16xf32>
    %c0 = arith.constant 0 : index
    %c0_0 = arith.constant 0 : index
    %c0_1 = arith.constant 0 : index
    %c0_2 = arith.constant 0 : index
    %1 = vector.load %arg1[%c0, %c0_0, %c0_1, %c0_2] : memref<8x8x8x64xbf16, #tpu.memory_space<vmem>>, vector<7x7x8x64xbf16>
    %2 = vector.shape_cast %1 : vector<7x7x8x64xbf16> to vector<392x64xbf16>
    %c0_3 = arith.constant 0 : index
    %c0_4 = arith.constant 0 : index
    %c0_5 = arith.constant 0 : index
    %3 = vector.load %arg2[%c0_3, %c0_4, %c0_5] : memref<4x64x16xbf16, #tpu.memory_space<vmem>>, vector<1x64x16xbf16>
    %4 = vector.shape_cast %3 : vector<1x64x16xbf16> to vector<64x16xbf16>
    %cst_6 = arith.constant dense<0.000000e+00> : vector<392x16xf32>
    %5 = tpu.matmul %2, %4, %cst_6 {dimension_numbers = #tpu.dot_dimension_numbers<[1], [0], [0], [1], [0, 0, 1, 1], [], []>} : vector<392x64xbf16>, vector<64x16xbf16>, vector<392x16xf32> -> vector<392x16xf32>
    %6 = arith.addf %0, %5 : vector<392x16xf32>
    %c0_7 = arith.constant 0 : index
    %c1 = arith.constant 1 : index
    %c0_8 = arith.constant 0 : index
    %c0_9 = arith.constant 0 : index
    %7 = vector.load %arg1[%c0_7, %c1, %c0_8, %c0_9] : memref<8x8x8x64xbf16, #tpu.memory_space<vmem>>, vector<7x7x8x64xbf16>
    %8 = vector.shape_cast %7 : vector<7x7x8x64xbf16> to vector<392x64xbf16>
    %c1_10 = arith.constant 1 : index
    %c0_11 = arith.constant 0 : index
    %c0_12 = arith.constant 0 : index
    %9 = vector.load %arg2[%c1_10, %c0_11, %c0_12] : memref<4x64x16xbf16, #tpu.memory_space<vmem>>, vector<1x64x16xbf16>
    %10 = vector.shape_cast %9 : vector<1x64x16xbf16> to vector<64x16xbf16>
    %cst_13 = arith.constant dense<0.000000e+00> : vector<392x16xf32>
    %11 = tpu.matmul %8, %10, %cst_13 {dimension_numbers = #tpu.dot_dimension_numbers<[1], [0], [0], [1], [0, 0, 1, 1], [], []>} : vector<392x64xbf16>, vector<64x16xbf16>, vector<392x16xf32> -> vector<392x16xf32>
    %12 = arith.addf %6, %11 : vector<392x16xf32>
    %c1_14 = arith.constant 1 : index
    %c0_15 = arith.constant 0 : index
    %c0_16 = arith.constant 0 : index
    %c0_17 = arith.constant 0 : index
    %13 = vector.load %arg1[%c1_14, %c0_15, %c0_16, %c0_17] : memref<8x8x8x64xbf16, #tpu.memory_space<vmem>>, vector<7x7x8x64xbf16>
    %14 = vector.shape_cast %13 : vector<7x7x8x64xbf16> to vector<392x64xbf16>
    %c2 = arith.constant 2 : index
    %c0_18 = arith.constant 0 : index
    %c0_19 = arith.constant 0 : index
    %15 = vector.load %arg2[%c2, %c0_18, %c0_19] : memref<4x64x16xbf16, #tpu.memory_space<vmem>>, vector<1x64x16xbf16>
    %16 = vector.shape_cast %15 : vector<1x64x16xbf16> to vector<64x16xbf16>
    %cst_20 = arith.constant dense<0.000000e+00> : vector<392x16xf32>
    %17 = tpu.matmul %14, %16, %cst_20 {dimension_numbers = #tpu.dot_dimension_numbers<[1], [0], [0], [1], [0, 0, 1, 1], [], []>} : vector<392x64xbf16>, vector<64x16xbf16>, vector<392x16xf32> -> vector<392x16xf32>
    %18 = arith.addf %12, %17 : vector<392x16xf32>
    %c1_21 = arith.constant 1 : index
    %c1_22 = arith.constant 1 : index
    %c0_23 = arith.constant 0 : index
    %c0_24 = arith.constant 0 : index
    %19 = vector.load %arg1[%c1_21, %c1_22, %c0_23, %c0_24] : memref<8x8x8x64xbf16, #tpu.memory_space<vmem>>, vector<7x7x8x64xbf16>
    %20 = vector.shape_cast %19 : vector<7x7x8x64xbf16> to vector<392x64xbf16>
    %c3 = arith.constant 3 : index
    %c0_25 = arith.constant 0 : index
    %c0_26 = arith.constant 0 : index
    %21 = vector.load %arg2[%c3, %c0_25, %c0_26] : memref<4x64x16xbf16, #tpu.memory_space<vmem>>, vector<1x64x16xbf16>
    %22 = vector.shape_cast %21 : vector<1x64x16xbf16> to vector<64x16xbf16>
    %cst_27 = arith.constant dense<0.000000e+00> : vector<392x16xf32>
    %23 = tpu.matmul %20, %22, %cst_27 {dimension_numbers = #tpu.dot_dimension_numbers<[1], [0], [0], [1], [0, 0, 1, 1], [], []>} : vector<392x64xbf16>, vector<64x16xbf16>, vector<392x16xf32> -> vector<392x16xf32>
    %24 = arith.addf %18, %23 : vector<392x16xf32>
    %c0_28 = arith.constant 0 : index
    %c0_29 = arith.constant 0 : index
    %25 = vector.load %arg3[%c0_28, %c0_29] : memref<1x16xf32, #tpu.memory_space<vmem>>, vector<1x16xf32>
    %26 = vector.broadcast %25 : vector<1x16xf32> to vector<392x16xf32>
    %27 = arith.addf %24, %26 : vector<392x16xf32>
    %cst_30 = arith.constant 0.000000e+00 : f32
    %28 = vector.broadcast %cst_30 : f32 to vector<392x16xf32>
    %29 = arith.maximumf %27, %28 : vector<392x16xf32>
    %30 = arith.truncf %29 : vector<392x16xf32> to vector<392x16xbf16>
    %31 = vector.shape_cast %30 : vector<392x16xbf16> to vector<7x7x8x16xbf16>
    %32 = vector.extract_strided_slice %31 {offsets = [0, 0, 0, 0], sizes = [6, 6, 8, 16], strides = [1, 1, 1, 1]} : vector<7x7x8x16xbf16> to vector<6x6x8x16xbf16>
    %33 = vector.shape_cast %32 : vector<6x6x8x16xbf16> to vector<3x2x3x2x8x16xbf16>
    %cst_31 = arith.constant 0.000000e+00 : f32
    %34 = vector.broadcast %cst_31 : f32 to vector<32x32xf32>
    %35 = vector.extract_strided_slice %33 {offsets = [0, 0, 0, 0, 0, 0], sizes = [2, 1, 2, 1, 8, 16], strides = [1, 1, 1, 1, 1, 1]} : vector<3x2x3x2x8x16xbf16> to vector<2x1x2x1x8x16xbf16>
    %36 = vector.shape_cast %35 : vector<2x1x2x1x8x16xbf16> to vector<2x2x8x16xbf16>
    %37 = vector.shape_cast %36 : vector<2x2x8x16xbf16> to vector<32x16xbf16>
    %c0_32 = arith.constant 0 : index
    %c0_33 = arith.constant 0 : index
    %c0_34 = arith.constant 0 : index
    %c0_35 = arith.constant 0 : index
    %38 = vector.load %arg4[%c0_32, %c0_33, %c0_34, %c0_35] : memref<4x4x16x32xbf16, #tpu.memory_space<vmem>>, vector<1x1x16x32xbf16>
    %39 = vector.shape_cast %38 : vector<1x1x16x32xbf16> to vector<16x32xbf16>
    %cst_36 = arith.constant dense<0.000000e+00> : vector<32x32xf32>
    %40 = tpu.matmul %37, %39, %cst_36 {dimension_numbers = #tpu.dot_dimension_numbers<[1], [0], [0], [1], [0, 0, 1, 1], [], []>} : vector<32x16xbf16>, vector<16x32xbf16>, vector<32x32xf32> -> vector<32x32xf32>
    %41 = arith.addf %34, %40 : vector<32x32xf32>
    %42 = vector.extract_strided_slice %33 {offsets = [0, 0, 0, 1, 0, 0], sizes = [2, 1, 2, 1, 8, 16], strides = [1, 1, 1, 1, 1, 1]} : vector<3x2x3x2x8x16xbf16> to vector<2x1x2x1x8x16xbf16>
    %43 = vector.shape_cast %42 : vector<2x1x2x1x8x16xbf16> to vector<2x2x8x16xbf16>
    %44 = vector.shape_cast %43 : vector<2x2x8x16xbf16> to vector<32x16xbf16>
    %c0_37 = arith.constant 0 : index
    %c1_38 = arith.constant 1 : index
    %c0_39 = arith.constant 0 : index
    %c0_40 = arith.constant 0 : index
    %45 = vector.load %arg4[%c0_37, %c1_38, %c0_39, %c0_40] : memref<4x4x16x32xbf16, #tpu.memory_space<vmem>>, vector<1x1x16x32xbf16>
    %46 = vector.shape_cast %45 : vector<1x1x16x32xbf16> to vector<16x32xbf16>
    %cst_41 = arith.constant dense<0.000000e+00> : vector<32x32xf32>
    %47 = tpu.matmul %44, %46, %cst_41 {dimension_numbers = #tpu.dot_dimension_numbers<[1], [0], [0], [1], [0, 0, 1, 1], [], []>} : vector<32x16xbf16>, vector<16x32xbf16>, vector<32x32xf32> -> vector<32x32xf32>
    %48 = arith.addf %41, %47 : vector<32x32xf32>
    %49 = vector.extract_strided_slice %33 {offsets = [0, 0, 1, 0, 0, 0], sizes = [2, 1, 2, 1, 8, 16], strides = [1, 1, 1, 1, 1, 1]} : vector<3x2x3x2x8x16xbf16> to vector<2x1x2x1x8x16xbf16>
    %50 = vector.shape_cast %49 : vector<2x1x2x1x8x16xbf16> to vector<2x2x8x16xbf16>
    %51 = vector.shape_cast %50 : vector<2x2x8x16xbf16> to vector<32x16xbf16>
    %c0_42 = arith.constant 0 : index
    %c2_43 = arith.constant 2 : index
    %c0_44 = arith.constant 0 : index
    %c0_45 = arith.constant 0 : index
    %52 = vector.load %arg4[%c0_42, %c2_43, %c0_44, %c0_45] : memref<4x4x16x32xbf16, #tpu.memory_space<vmem>>, vector<1x1x16x32xbf16>
    %53 = vector.shape_cast %52 : vector<1x1x16x32xbf16> to vector<16x32xbf16>
    %cst_46 = arith.constant dense<0.000000e+00> : vector<32x32xf32>
    %54 = tpu.matmul %51, %53, %cst_46 {dimension_numbers = #tpu.dot_dimension_numbers<[1], [0], [0], [1], [0, 0, 1, 1], [], []>} : vector<32x16xbf16>, vector<16x32xbf16>, vector<32x32xf32> -> vector<32x32xf32>
    %55 = arith.addf %48, %54 : vector<32x32xf32>
    %56 = vector.extract_strided_slice %33 {offsets = [0, 0, 1, 1, 0, 0], sizes = [2, 1, 2, 1, 8, 16], strides = [1, 1, 1, 1, 1, 1]} : vector<3x2x3x2x8x16xbf16> to vector<2x1x2x1x8x16xbf16>
    %57 = vector.shape_cast %56 : vector<2x1x2x1x8x16xbf16> to vector<2x2x8x16xbf16>
    %58 = vector.shape_cast %57 : vector<2x2x8x16xbf16> to vector<32x16xbf16>
    %c0_47 = arith.constant 0 : index
    %c3_48 = arith.constant 3 : index
    %c0_49 = arith.constant 0 : index
    %c0_50 = arith.constant 0 : index
    %59 = vector.load %arg4[%c0_47, %c3_48, %c0_49, %c0_50] : memref<4x4x16x32xbf16, #tpu.memory_space<vmem>>, vector<1x1x16x32xbf16>
    %60 = vector.shape_cast %59 : vector<1x1x16x32xbf16> to vector<16x32xbf16>
    %cst_51 = arith.constant dense<0.000000e+00> : vector<32x32xf32>
    %61 = tpu.matmul %58, %60, %cst_51 {dimension_numbers = #tpu.dot_dimension_numbers<[1], [0], [0], [1], [0, 0, 1, 1], [], []>} : vector<32x16xbf16>, vector<16x32xbf16>, vector<32x32xf32> -> vector<32x32xf32>
    %62 = arith.addf %55, %61 : vector<32x32xf32>
    %63 = vector.extract_strided_slice %33 {offsets = [0, 1, 0, 0, 0, 0], sizes = [2, 1, 2, 1, 8, 16], strides = [1, 1, 1, 1, 1, 1]} : vector<3x2x3x2x8x16xbf16> to vector<2x1x2x1x8x16xbf16>
    %64 = vector.shape_cast %63 : vector<2x1x2x1x8x16xbf16> to vector<2x2x8x16xbf16>
    %65 = vector.shape_cast %64 : vector<2x2x8x16xbf16> to vector<32x16xbf16>
    %c1_52 = arith.constant 1 : index
    %c0_53 = arith.constant 0 : index
    %c0_54 = arith.constant 0 : index
    %c0_55 = arith.constant 0 : index
    %66 = vector.load %arg4[%c1_52, %c0_53, %c0_54, %c0_55] : memref<4x4x16x32xbf16, #tpu.memory_space<vmem>>, vector<1x1x16x32xbf16>
    %67 = vector.shape_cast %66 : vector<1x1x16x32xbf16> to vector<16x32xbf16>
    %cst_56 = arith.constant dense<0.000000e+00> : vector<32x32xf32>
    %68 = tpu.matmul %65, %67, %cst_56 {dimension_numbers = #tpu.dot_dimension_numbers<[1], [0], [0], [1], [0, 0, 1, 1], [], []>} : vector<32x16xbf16>, vector<16x32xbf16>, vector<32x32xf32> -> vector<32x32xf32>
    %69 = arith.addf %62, %68 : vector<32x32xf32>
    %70 = vector.extract_strided_slice %33 {offsets = [0, 1, 0, 1, 0, 0], sizes = [2, 1, 2, 1, 8, 16], strides = [1, 1, 1, 1, 1, 1]} : vector<3x2x3x2x8x16xbf16> to vector<2x1x2x1x8x16xbf16>
    %71 = vector.shape_cast %70 : vector<2x1x2x1x8x16xbf16> to vector<2x2x8x16xbf16>
    %72 = vector.shape_cast %71 : vector<2x2x8x16xbf16> to vector<32x16xbf16>
    %c1_57 = arith.constant 1 : index
    %c1_58 = arith.constant 1 : index
    %c0_59 = arith.constant 0 : index
    %c0_60 = arith.constant 0 : index
    %73 = vector.load %arg4[%c1_57, %c1_58, %c0_59, %c0_60] : memref<4x4x16x32xbf16, #tpu.memory_space<vmem>>, vector<1x1x16x32xbf16>
    %74 = vector.shape_cast %73 : vector<1x1x16x32xbf16> to vector<16x32xbf16>
    %cst_61 = arith.constant dense<0.000000e+00> : vector<32x32xf32>
    %75 = tpu.matmul %72, %74, %cst_61 {dimension_numbers = #tpu.dot_dimension_numbers<[1], [0], [0], [1], [0, 0, 1, 1], [], []>} : vector<32x16xbf16>, vector<16x32xbf16>, vector<32x32xf32> -> vector<32x32xf32>
    %76 = arith.addf %69, %75 : vector<32x32xf32>
    %77 = vector.extract_strided_slice %33 {offsets = [0, 1, 1, 0, 0, 0], sizes = [2, 1, 2, 1, 8, 16], strides = [1, 1, 1, 1, 1, 1]} : vector<3x2x3x2x8x16xbf16> to vector<2x1x2x1x8x16xbf16>
    %78 = vector.shape_cast %77 : vector<2x1x2x1x8x16xbf16> to vector<2x2x8x16xbf16>
    %79 = vector.shape_cast %78 : vector<2x2x8x16xbf16> to vector<32x16xbf16>
    %c1_62 = arith.constant 1 : index
    %c2_63 = arith.constant 2 : index
    %c0_64 = arith.constant 0 : index
    %c0_65 = arith.constant 0 : index
    %80 = vector.load %arg4[%c1_62, %c2_63, %c0_64, %c0_65] : memref<4x4x16x32xbf16, #tpu.memory_space<vmem>>, vector<1x1x16x32xbf16>
    %81 = vector.shape_cast %80 : vector<1x1x16x32xbf16> to vector<16x32xbf16>
    %cst_66 = arith.constant dense<0.000000e+00> : vector<32x32xf32>
    %82 = tpu.matmul %79, %81, %cst_66 {dimension_numbers = #tpu.dot_dimension_numbers<[1], [0], [0], [1], [0, 0, 1, 1], [], []>} : vector<32x16xbf16>, vector<16x32xbf16>, vector<32x32xf32> -> vector<32x32xf32>
    %83 = arith.addf %76, %82 : vector<32x32xf32>
    %84 = vector.extract_strided_slice %33 {offsets = [0, 1, 1, 1, 0, 0], sizes = [2, 1, 2, 1, 8, 16], strides = [1, 1, 1, 1, 1, 1]} : vector<3x2x3x2x8x16xbf16> to vector<2x1x2x1x8x16xbf16>
    %85 = vector.shape_cast %84 : vector<2x1x2x1x8x16xbf16> to vector<2x2x8x16xbf16>
    %86 = vector.shape_cast %85 : vector<2x2x8x16xbf16> to vector<32x16xbf16>
    %c1_67 = arith.constant 1 : index
    %c3_68 = arith.constant 3 : index
    %c0_69 = arith.constant 0 : index
    %c0_70 = arith.constant 0 : index
    %87 = vector.load %arg4[%c1_67, %c3_68, %c0_69, %c0_70] : memref<4x4x16x32xbf16, #tpu.memory_space<vmem>>, vector<1x1x16x32xbf16>
    %88 = vector.shape_cast %87 : vector<1x1x16x32xbf16> to vector<16x32xbf16>
    %cst_71 = arith.constant dense<0.000000e+00> : vector<32x32xf32>
    %89 = tpu.matmul %86, %88, %cst_71 {dimension_numbers = #tpu.dot_dimension_numbers<[1], [0], [0], [1], [0, 0, 1, 1], [], []>} : vector<32x16xbf16>, vector<16x32xbf16>, vector<32x32xf32> -> vector<32x32xf32>
    %90 = arith.addf %83, %89 : vector<32x32xf32>
    %91 = vector.extract_strided_slice %33 {offsets = [1, 0, 0, 0, 0, 0], sizes = [2, 1, 2, 1, 8, 16], strides = [1, 1, 1, 1, 1, 1]} : vector<3x2x3x2x8x16xbf16> to vector<2x1x2x1x8x16xbf16>
    %92 = vector.shape_cast %91 : vector<2x1x2x1x8x16xbf16> to vector<2x2x8x16xbf16>
    %93 = vector.shape_cast %92 : vector<2x2x8x16xbf16> to vector<32x16xbf16>
    %c2_72 = arith.constant 2 : index
    %c0_73 = arith.constant 0 : index
    %c0_74 = arith.constant 0 : index
    %c0_75 = arith.constant 0 : index
    %94 = vector.load %arg4[%c2_72, %c0_73, %c0_74, %c0_75] : memref<4x4x16x32xbf16, #tpu.memory_space<vmem>>, vector<1x1x16x32xbf16>
    %95 = vector.shape_cast %94 : vector<1x1x16x32xbf16> to vector<16x32xbf16>
    %cst_76 = arith.constant dense<0.000000e+00> : vector<32x32xf32>
    %96 = tpu.matmul %93, %95, %cst_76 {dimension_numbers = #tpu.dot_dimension_numbers<[1], [0], [0], [1], [0, 0, 1, 1], [], []>} : vector<32x16xbf16>, vector<16x32xbf16>, vector<32x32xf32> -> vector<32x32xf32>
    %97 = arith.addf %90, %96 : vector<32x32xf32>
    %98 = vector.extract_strided_slice %33 {offsets = [1, 0, 0, 1, 0, 0], sizes = [2, 1, 2, 1, 8, 16], strides = [1, 1, 1, 1, 1, 1]} : vector<3x2x3x2x8x16xbf16> to vector<2x1x2x1x8x16xbf16>
    %99 = vector.shape_cast %98 : vector<2x1x2x1x8x16xbf16> to vector<2x2x8x16xbf16>
    %100 = vector.shape_cast %99 : vector<2x2x8x16xbf16> to vector<32x16xbf16>
    %c2_77 = arith.constant 2 : index
    %c1_78 = arith.constant 1 : index
    %c0_79 = arith.constant 0 : index
    %c0_80 = arith.constant 0 : index
    %101 = vector.load %arg4[%c2_77, %c1_78, %c0_79, %c0_80] : memref<4x4x16x32xbf16, #tpu.memory_space<vmem>>, vector<1x1x16x32xbf16>
    %102 = vector.shape_cast %101 : vector<1x1x16x32xbf16> to vector<16x32xbf16>
    %cst_81 = arith.constant dense<0.000000e+00> : vector<32x32xf32>
    %103 = tpu.matmul %100, %102, %cst_81 {dimension_numbers = #tpu.dot_dimension_numbers<[1], [0], [0], [1], [0, 0, 1, 1], [], []>} : vector<32x16xbf16>, vector<16x32xbf16>, vector<32x32xf32> -> vector<32x32xf32>
    %104 = arith.addf %97, %103 : vector<32x32xf32>
    %105 = vector.extract_strided_slice %33 {offsets = [1, 0, 1, 0, 0, 0], sizes = [2, 1, 2, 1, 8, 16], strides = [1, 1, 1, 1, 1, 1]} : vector<3x2x3x2x8x16xbf16> to vector<2x1x2x1x8x16xbf16>
    %106 = vector.shape_cast %105 : vector<2x1x2x1x8x16xbf16> to vector<2x2x8x16xbf16>
    %107 = vector.shape_cast %106 : vector<2x2x8x16xbf16> to vector<32x16xbf16>
    %c2_82 = arith.constant 2 : index
    %c2_83 = arith.constant 2 : index
    %c0_84 = arith.constant 0 : index
    %c0_85 = arith.constant 0 : index
    %108 = vector.load %arg4[%c2_82, %c2_83, %c0_84, %c0_85] : memref<4x4x16x32xbf16, #tpu.memory_space<vmem>>, vector<1x1x16x32xbf16>
    %109 = vector.shape_cast %108 : vector<1x1x16x32xbf16> to vector<16x32xbf16>
    %cst_86 = arith.constant dense<0.000000e+00> : vector<32x32xf32>
    %110 = tpu.matmul %107, %109, %cst_86 {dimension_numbers = #tpu.dot_dimension_numbers<[1], [0], [0], [1], [0, 0, 1, 1], [], []>} : vector<32x16xbf16>, vector<16x32xbf16>, vector<32x32xf32> -> vector<32x32xf32>
    %111 = arith.addf %104, %110 : vector<32x32xf32>
    %112 = vector.extract_strided_slice %33 {offsets = [1, 0, 1, 1, 0, 0], sizes = [2, 1, 2, 1, 8, 16], strides = [1, 1, 1, 1, 1, 1]} : vector<3x2x3x2x8x16xbf16> to vector<2x1x2x1x8x16xbf16>
    %113 = vector.shape_cast %112 : vector<2x1x2x1x8x16xbf16> to vector<2x2x8x16xbf16>
    %114 = vector.shape_cast %113 : vector<2x2x8x16xbf16> to vector<32x16xbf16>
    %c2_87 = arith.constant 2 : index
    %c3_88 = arith.constant 3 : index
    %c0_89 = arith.constant 0 : index
    %c0_90 = arith.constant 0 : index
    %115 = vector.load %arg4[%c2_87, %c3_88, %c0_89, %c0_90] : memref<4x4x16x32xbf16, #tpu.memory_space<vmem>>, vector<1x1x16x32xbf16>
    %116 = vector.shape_cast %115 : vector<1x1x16x32xbf16> to vector<16x32xbf16>
    %cst_91 = arith.constant dense<0.000000e+00> : vector<32x32xf32>
    %117 = tpu.matmul %114, %116, %cst_91 {dimension_numbers = #tpu.dot_dimension_numbers<[1], [0], [0], [1], [0, 0, 1, 1], [], []>} : vector<32x16xbf16>, vector<16x32xbf16>, vector<32x32xf32> -> vector<32x32xf32>
    %118 = arith.addf %111, %117 : vector<32x32xf32>
    %119 = vector.extract_strided_slice %33 {offsets = [1, 1, 0, 0, 0, 0], sizes = [2, 1, 2, 1, 8, 16], strides = [1, 1, 1, 1, 1, 1]} : vector<3x2x3x2x8x16xbf16> to vector<2x1x2x1x8x16xbf16>
    %120 = vector.shape_cast %119 : vector<2x1x2x1x8x16xbf16> to vector<2x2x8x16xbf16>
    %121 = vector.shape_cast %120 : vector<2x2x8x16xbf16> to vector<32x16xbf16>
    %c3_92 = arith.constant 3 : index
    %c0_93 = arith.constant 0 : index
    %c0_94 = arith.constant 0 : index
    %c0_95 = arith.constant 0 : index
    %122 = vector.load %arg4[%c3_92, %c0_93, %c0_94, %c0_95] : memref<4x4x16x32xbf16, #tpu.memory_space<vmem>>, vector<1x1x16x32xbf16>
    %123 = vector.shape_cast %122 : vector<1x1x16x32xbf16> to vector<16x32xbf16>
    %cst_96 = arith.constant dense<0.000000e+00> : vector<32x32xf32>
    %124 = tpu.matmul %121, %123, %cst_96 {dimension_numbers = #tpu.dot_dimension_numbers<[1], [0], [0], [1], [0, 0, 1, 1], [], []>} : vector<32x16xbf16>, vector<16x32xbf16>, vector<32x32xf32> -> vector<32x32xf32>
    %125 = arith.addf %118, %124 : vector<32x32xf32>
    %126 = vector.extract_strided_slice %33 {offsets = [1, 1, 0, 1, 0, 0], sizes = [2, 1, 2, 1, 8, 16], strides = [1, 1, 1, 1, 1, 1]} : vector<3x2x3x2x8x16xbf16> to vector<2x1x2x1x8x16xbf16>
    %127 = vector.shape_cast %126 : vector<2x1x2x1x8x16xbf16> to vector<2x2x8x16xbf16>
    %128 = vector.shape_cast %127 : vector<2x2x8x16xbf16> to vector<32x16xbf16>
    %c3_97 = arith.constant 3 : index
    %c1_98 = arith.constant 1 : index
    %c0_99 = arith.constant 0 : index
    %c0_100 = arith.constant 0 : index
    %129 = vector.load %arg4[%c3_97, %c1_98, %c0_99, %c0_100] : memref<4x4x16x32xbf16, #tpu.memory_space<vmem>>, vector<1x1x16x32xbf16>
    %130 = vector.shape_cast %129 : vector<1x1x16x32xbf16> to vector<16x32xbf16>
    %cst_101 = arith.constant dense<0.000000e+00> : vector<32x32xf32>
    %131 = tpu.matmul %128, %130, %cst_101 {dimension_numbers = #tpu.dot_dimension_numbers<[1], [0], [0], [1], [0, 0, 1, 1], [], []>} : vector<32x16xbf16>, vector<16x32xbf16>, vector<32x32xf32> -> vector<32x32xf32>
    %132 = arith.addf %125, %131 : vector<32x32xf32>
    %133 = vector.extract_strided_slice %33 {offsets = [1, 1, 1, 0, 0, 0], sizes = [2, 1, 2, 1, 8, 16], strides = [1, 1, 1, 1, 1, 1]} : vector<3x2x3x2x8x16xbf16> to vector<2x1x2x1x8x16xbf16>
    %134 = vector.shape_cast %133 : vector<2x1x2x1x8x16xbf16> to vector<2x2x8x16xbf16>
    %135 = vector.shape_cast %134 : vector<2x2x8x16xbf16> to vector<32x16xbf16>
    %c3_102 = arith.constant 3 : index
    %c2_103 = arith.constant 2 : index
    %c0_104 = arith.constant 0 : index
    %c0_105 = arith.constant 0 : index
    %136 = vector.load %arg4[%c3_102, %c2_103, %c0_104, %c0_105] : memref<4x4x16x32xbf16, #tpu.memory_space<vmem>>, vector<1x1x16x32xbf16>
    %137 = vector.shape_cast %136 : vector<1x1x16x32xbf16> to vector<16x32xbf16>
    %cst_106 = arith.constant dense<0.000000e+00> : vector<32x32xf32>
    %138 = tpu.matmul %135, %137, %cst_106 {dimension_numbers = #tpu.dot_dimension_numbers<[1], [0], [0], [1], [0, 0, 1, 1], [], []>} : vector<32x16xbf16>, vector<16x32xbf16>, vector<32x32xf32> -> vector<32x32xf32>
    %139 = arith.addf %132, %138 : vector<32x32xf32>
    %140 = vector.extract_strided_slice %33 {offsets = [1, 1, 1, 1, 0, 0], sizes = [2, 1, 2, 1, 8, 16], strides = [1, 1, 1, 1, 1, 1]} : vector<3x2x3x2x8x16xbf16> to vector<2x1x2x1x8x16xbf16>
    %141 = vector.shape_cast %140 : vector<2x1x2x1x8x16xbf16> to vector<2x2x8x16xbf16>
    %142 = vector.shape_cast %141 : vector<2x2x8x16xbf16> to vector<32x16xbf16>
    %c3_107 = arith.constant 3 : index
    %c3_108 = arith.constant 3 : index
    %c0_109 = arith.constant 0 : index
    %c0_110 = arith.constant 0 : index
    %143 = vector.load %arg4[%c3_107, %c3_108, %c0_109, %c0_110] : memref<4x4x16x32xbf16, #tpu.memory_space<vmem>>, vector<1x1x16x32xbf16>
    %144 = vector.shape_cast %143 : vector<1x1x16x32xbf16> to vector<16x32xbf16>
    %cst_111 = arith.constant dense<0.000000e+00> : vector<32x32xf32>
    %145 = tpu.matmul %142, %144, %cst_111 {dimension_numbers = #tpu.dot_dimension_numbers<[1], [0], [0], [1], [0, 0, 1, 1], [], []>} : vector<32x16xbf16>, vector<16x32xbf16>, vector<32x32xf32> -> vector<32x32xf32>
    %146 = arith.addf %139, %145 : vector<32x32xf32>
    %c0_112 = arith.constant 0 : index
    %c0_113 = arith.constant 0 : index
    %147 = vector.load %arg5[%c0_112, %c0_113] : memref<1x32xf32, #tpu.memory_space<vmem>>, vector<1x32xf32>
    %148 = vector.broadcast %147 : vector<1x32xf32> to vector<32x32xf32>
    %149 = arith.addf %146, %148 : vector<32x32xf32>
    %cst_114 = arith.constant 0.000000e+00 : f32
    %150 = vector.broadcast %cst_114 : f32 to vector<32x32xf32>
    %151 = arith.maximumf %149, %150 : vector<32x32xf32>
    %152 = arith.truncf %151 : vector<32x32xf32> to vector<32x32xbf16>
    %153 = vector.shape_cast %152 : vector<32x32xbf16> to vector<2x2x8x32xbf16>
    %cst_115 = arith.constant 0.000000e+00 : f32
    %154 = vector.broadcast %cst_115 : f32 to vector<8x256xf32>
    %155 = vector.extract_strided_slice %153 {offsets = [0, 0, 0, 0], sizes = [1, 1, 8, 32], strides = [1, 1, 1, 1]} : vector<2x2x8x32xbf16> to vector<1x1x8x32xbf16>
    %156 = vector.shape_cast %155 : vector<1x1x8x32xbf16> to vector<8x32xbf16>
    %c0_116 = arith.constant 0 : index
    %c0_117 = arith.constant 0 : index
    %c0_118 = arith.constant 0 : index
    %c0_119 = arith.constant 0 : index
    %157 = vector.load %arg6[%c0_116, %c0_117, %c0_118, %c0_119] : memref<2x2x32x256xbf16, #tpu.memory_space<vmem>>, vector<1x1x32x256xbf16>
    %158 = vector.shape_cast %157 : vector<1x1x32x256xbf16> to vector<32x256xbf16>
    %cst_120 = arith.constant dense<0.000000e+00> : vector<8x256xf32>
    %159 = tpu.matmul %156, %158, %cst_120 {dimension_numbers = #tpu.dot_dimension_numbers<[1], [0], [0], [1], [0, 0, 1, 1], [], []>} : vector<8x32xbf16>, vector<32x256xbf16>, vector<8x256xf32> -> vector<8x256xf32>
    %160 = arith.addf %154, %159 : vector<8x256xf32>
    %161 = vector.extract_strided_slice %153 {offsets = [0, 1, 0, 0], sizes = [1, 1, 8, 32], strides = [1, 1, 1, 1]} : vector<2x2x8x32xbf16> to vector<1x1x8x32xbf16>
    %162 = vector.shape_cast %161 : vector<1x1x8x32xbf16> to vector<8x32xbf16>
    %c0_121 = arith.constant 0 : index
    %c1_122 = arith.constant 1 : index
    %c0_123 = arith.constant 0 : index
    %c0_124 = arith.constant 0 : index
    %163 = vector.load %arg6[%c0_121, %c1_122, %c0_123, %c0_124] : memref<2x2x32x256xbf16, #tpu.memory_space<vmem>>, vector<1x1x32x256xbf16>
    %164 = vector.shape_cast %163 : vector<1x1x32x256xbf16> to vector<32x256xbf16>
    %cst_125 = arith.constant dense<0.000000e+00> : vector<8x256xf32>
    %165 = tpu.matmul %162, %164, %cst_125 {dimension_numbers = #tpu.dot_dimension_numbers<[1], [0], [0], [1], [0, 0, 1, 1], [], []>} : vector<8x32xbf16>, vector<32x256xbf16>, vector<8x256xf32> -> vector<8x256xf32>
    %166 = arith.addf %160, %165 : vector<8x256xf32>
    %167 = vector.extract_strided_slice %153 {offsets = [1, 0, 0, 0], sizes = [1, 1, 8, 32], strides = [1, 1, 1, 1]} : vector<2x2x8x32xbf16> to vector<1x1x8x32xbf16>
    %168 = vector.shape_cast %167 : vector<1x1x8x32xbf16> to vector<8x32xbf16>
    %c1_126 = arith.constant 1 : index
    %c0_127 = arith.constant 0 : index
    %c0_128 = arith.constant 0 : index
    %c0_129 = arith.constant 0 : index
    %169 = vector.load %arg6[%c1_126, %c0_127, %c0_128, %c0_129] : memref<2x2x32x256xbf16, #tpu.memory_space<vmem>>, vector<1x1x32x256xbf16>
    %170 = vector.shape_cast %169 : vector<1x1x32x256xbf16> to vector<32x256xbf16>
    %cst_130 = arith.constant dense<0.000000e+00> : vector<8x256xf32>
    %171 = tpu.matmul %168, %170, %cst_130 {dimension_numbers = #tpu.dot_dimension_numbers<[1], [0], [0], [1], [0, 0, 1, 1], [], []>} : vector<8x32xbf16>, vector<32x256xbf16>, vector<8x256xf32> -> vector<8x256xf32>
    %172 = arith.addf %166, %171 : vector<8x256xf32>
    %173 = vector.extract_strided_slice %153 {offsets = [1, 1, 0, 0], sizes = [1, 1, 8, 32], strides = [1, 1, 1, 1]} : vector<2x2x8x32xbf16> to vector<1x1x8x32xbf16>
    %174 = vector.shape_cast %173 : vector<1x1x8x32xbf16> to vector<8x32xbf16>
    %c1_131 = arith.constant 1 : index
    %c1_132 = arith.constant 1 : index
    %c0_133 = arith.constant 0 : index
    %c0_134 = arith.constant 0 : index
    %175 = vector.load %arg6[%c1_131, %c1_132, %c0_133, %c0_134] : memref<2x2x32x256xbf16, #tpu.memory_space<vmem>>, vector<1x1x32x256xbf16>
    %176 = vector.shape_cast %175 : vector<1x1x32x256xbf16> to vector<32x256xbf16>
    %cst_135 = arith.constant dense<0.000000e+00> : vector<8x256xf32>
    %177 = tpu.matmul %174, %176, %cst_135 {dimension_numbers = #tpu.dot_dimension_numbers<[1], [0], [0], [1], [0, 0, 1, 1], [], []>} : vector<8x32xbf16>, vector<32x256xbf16>, vector<8x256xf32> -> vector<8x256xf32>
    %178 = arith.addf %172, %177 : vector<8x256xf32>
    %c0_136 = arith.constant 0 : index
    %c0_137 = arith.constant 0 : index
    %179 = vector.load %arg7[%c0_136, %c0_137] : memref<1x256xf32, #tpu.memory_space<vmem>>, vector<1x256xf32>
    %180 = vector.broadcast %179 : vector<1x256xf32> to vector<8x256xf32>
    %181 = arith.addf %178, %180 : vector<8x256xf32>
    %cst_138 = arith.constant 0.000000e+00 : f32
    %182 = vector.broadcast %cst_138 : f32 to vector<8x256xf32>
    %183 = arith.maximumf %181, %182 : vector<8x256xf32>
    %184 = arith.truncf %183 : vector<8x256xf32> to vector<8x256xbf16>
    %c0_139 = arith.constant 0 : index
    %c0_140 = arith.constant 0 : index
    %185 = vector.load %arg8[%c0_139, %c0_140] : memref<256x128xbf16, #tpu.memory_space<vmem>>, vector<256x128xbf16>
    %cst_141 = arith.constant dense<0.000000e+00> : vector<8x128xf32>
    %186 = tpu.matmul %184, %185, %cst_141 {dimension_numbers = #tpu.dot_dimension_numbers<[1], [0], [0], [1], [0, 0, 1, 1], [], []>} : vector<8x256xbf16>, vector<256x128xbf16>, vector<8x128xf32> -> vector<8x128xf32>
    %c0_142 = arith.constant 0 : index
    %c0_143 = arith.constant 0 : index
    %187 = vector.load %arg9[%c0_142, %c0_143] : memref<1x128xf32, #tpu.memory_space<vmem>>, vector<1x128xf32>
    %188 = vector.broadcast %187 : vector<1x128xf32> to vector<8x128xf32>
    %189 = arith.addf %186, %188 : vector<8x128xf32>
    %c0_144 = arith.constant 0 : index
    %c0_145 = arith.constant 0 : index
    %190 = vector.load %arg10[%c0_144, %c0_145] : memref<8x128xf32, #tpu.memory_space<vmem>>, vector<8x128xf32>
    tpu.vector_store %arg10[%c0_144, %c0_145], %189 {strides = array<i32>} : memref<8x128xf32, #tpu.memory_space<vmem>>, vector<8x128xf32>,
    return
  }
  func.func @transform_0(%arg0: i32) -> (i32, i32, i32, i32) {
    %c0_i32 = arith.constant 0 : i32
    %c0_i32_0 = arith.constant 0 : i32
    %c0_i32_1 = arith.constant 0 : i32
    %c0_i32_2 = arith.constant 0 : i32
    return %c0_i32, %c0_i32_0, %arg0, %c0_i32_1 : i32, i32, i32, i32
  }
  func.func @transform_1(%arg0: i32) -> (i32, i32, i32) {
    %c0_i32 = arith.constant 0 : i32
    %c0_i32_0 = arith.constant 0 : i32
    %c0_i32_1 = arith.constant 0 : i32
    %c0_i32_2 = arith.constant 0 : i32
    return %c0_i32, %c0_i32_0, %c0_i32_1 : i32, i32, i32
  }
  func.func @transform_2(%arg0: i32) -> (i32, i32) {
    %c0_i32 = arith.constant 0 : i32
    %c0_i32_0 = arith.constant 0 : i32
    %c0_i32_1 = arith.constant 0 : i32
    return %c0_i32, %c0_i32_0 : i32, i32
  }
  func.func @transform_3(%arg0: i32) -> (i32, i32, i32, i32) {
    %c0_i32 = arith.constant 0 : i32
    %c0_i32_0 = arith.constant 0 : i32
    %c0_i32_1 = arith.constant 0 : i32
    %c0_i32_2 = arith.constant 0 : i32
    %c0_i32_3 = arith.constant 0 : i32
    return %c0_i32, %c0_i32_0, %c0_i32_1, %c0_i32_2 : i32, i32, i32, i32
  }
  func.func @transform_4(%arg0: i32) -> (i32, i32) {
    %c0_i32 = arith.constant 0 : i32
    %c0_i32_0 = arith.constant 0 : i32
    %c0_i32_1 = arith.constant 0 : i32
    return %c0_i32, %c0_i32_0 : i32, i32
  }
  func.func @transform_5(%arg0: i32) -> (i32, i32, i32, i32) {
    %c0_i32 = arith.constant 0 : i32
    %c0_i32_0 = arith.constant 0 : i32
    %c0_i32_1 = arith.constant 0 : i32
    %c0_i32_2 = arith.constant 0 : i32
    %c0_i32_3 = arith.constant 0 : i32
    return %c0_i32, %c0_i32_0, %c0_i32_1, %c0_i32_2 : i32, i32, i32, i32
  }
  func.func @transform_6(%arg0: i32) -> (i32, i32) {
    %c0_i32 = arith.constant 0 : i32
    %c0_i32_0 = arith.constant 0 : i32
    %c0_i32_1 = arith.constant 0 : i32
    return %c0_i32, %c0_i32_0 : i32, i32
  }
  func.func @transform_7(%arg0: i32) -> (i32, i32) {
    %c0_i32 = arith.constant 0 : i32
    %c0_i32_0 = arith.constant 0 : i32
    %c0_i32_1 = arith.constant 0 : i32
    return %c0_i32, %c0_i32_0 : i32, i32
  }
  func.func @transform_8(%arg0: i32) -> (i32, i32) {
    %c0_i32 = arith.constant 0 : i32
    %c0_i32_0 = arith.constant 0 : i32
    %c0_i32_1 = arith.constant 0 : i32
    return %c0_i32, %c0_i32_0 : i32, i32
  }
  func.func @transform_9(%arg0: i32) -> (i32, i32) {
    %c0_i32 = arith.constant 0 : i32
    %c0_i32_0 = arith.constant 0 : i32
    return %arg0, %c0_i32 : i32, i32
  }
}

</mosaic_0001>

<bundles_post_ra>
// kernel: deep_q_forward.1
= control target key start
LH: loop header
LB: loop body
LE: loop exit
PB: predicated region body
PF: predicated region fallthrough
CT: control target
= control target key end

     0   :  { %s6182_s30 = smov 0   ;;  %s6184_s10 = smov 0   ;;  %s7416_s0 = inlined_call_operand.vmem [shape: bf16[8,8,16,64], index: 0, kind: input, shape index: {}]   ;;  %s7417_s1 = inlined_call_operand.vmem [shape: bf16[4,64,16], index: 1, kind: input, shape index: {}]   ;;  %s7418_s2 = inlined_call_operand.vmem [shape: f32[1,16], index: 2, kind: input, shape index: {}]   ;;  %s7419_s3 = inlined_call_operand.vmem [shape: bf16[4,4,16,32], index: 3, kind: input, shape index: {}]   ;;  %s7420_s4 = inlined_call_operand.vmem [shape: f32[1,32], index: 4, kind: input, shape index: {}]   ;;  %s7421_s5 = inlined_call_operand.vmem [shape: bf16[2,2,32,256], index: 5, kind: input, shape index: {}]   ;;  %s7422_s6 = inlined_call_operand.vmem [shape: f32[1,256], index: 6, kind: input, shape index: {}]   ;;  %s7423_s7 = inlined_call_operand.vmem [shape: bf16[256,128], index: 7, kind: input, shape index: {}]   ;;  %s7424_s8 = inlined_call_operand.vmem [shape: f32[1,128], index: 8, kind: input, shape index: {}]   ;;  %s7425_s9 = inlined_call_operand.vmem [shape: f32[16,128], index: 9, kind: output, shape index: {}]  }
   0x1   :  { %s6186_s11 = smov 0  }
   0x2 LB: > { %s4541_s12 = sadd.s32 4294967295, %s6127_s11   ;;  %s6199_s13 = sadd.s32 1, %s6127_s11   ;;  %s6127_s11 = sphi %s6186_s11, %s7428_s11   ;;  %s6123_s10 = sphi %s6184_s10, %s7427_s10   ;;  %s6119_s30 = sphi %s6182_s30, %s7426_s30  }
   0x3   : > { %s23_s14 = ssub.s32 %s6127_s11, %s6199_s13  ;;  %s26_s15 = sadd.s32 1, %s6123_s10 }
   0x4   : > { %p24_p0 = scmp.eq.s32.totalorder %s23_s14, 0  ;;  %p33_p1 = scmp.ne.s32.totalorder %s6123_s10, %s6119_s30 }
   0x5   : > { %p34_p2 = scmp.eq.s32.totalorder %s6127_s11, 0  ;;  %p4544_p4 = scmp.ge.s32.totalorder %s6127_s11, 2 }
   0x6   : > { %s6208_s16 = scalar_select %p24_p0, %s6123_s10, %s26_s15  }
   0x7   : > { %p35_p3 = por %p34_p2, %p33_p1  ;;  %277 = sbr.rel (%p4544_p4) target bundleno = 60 (0x3c), region = 48 }
   0xe   : > { %280 = sbr.rel (!%p35_p3) target bundleno = 60 (0x3c), region = 52  ;;  %s282_s17 = sand.u32 (%p35_p3), 1, %s6123_s10  }
   0xf   : > { %s4546_s18 = sshll.u32 (%p35_p3), %s6127_s11, 2  ;;  %s4545_s19 = sshll.u32 (%p35_p3), %s282_s17, 8 }
  0x10   : > { %s6216_s22 = scalar_lea.vmem (%p35_p3), %s7416_s0, %s4546_s18  ;;  %s6220_s23 = scalar_lea.vmem (%p35_p3), [#allocation2], %s4545_s19 }
  0x11   : > { %v302_v0 = vld [vmem:[%s6216_s22] sm:$0xf] (%p35_p3)  ;;  %v304_v1 = vld [vmem:[%s6216_s22 + $0x8] sm:$0xf] (%p35_p3)  ;;  %v306_v2 = vld [vmem:[%s6216_s22 + $0x10] sm:$0xf] (%p35_p3) }
  0x12   : > { %303 = vst [vmem:[%s6220_s23] sm:$0xf] (%p35_p3), %v302_v0  ;;  %305 = vst [vmem:[%s6220_s23 + $0x4] sm:$0xf] (%p35_p3), %v304_v1  ;;  %v308_v3 = vld [vmem:[%s6216_s22 + $0x18] sm:$0xf] (%p35_p3) }
  0x13   : > { %v310_v4 = vld [vmem:[%s6216_s22 + $0x20] sm:$0xf] (%p35_p3)  ;;  %307 = vst [vmem:[%s6220_s23 + $0x8] sm:$0xf] (%p35_p3), %v306_v2  ;;  %309 = vst [vmem:[%s6220_s23 + $0xc] sm:$0xf] (%p35_p3), %v308_v3 }
  0x14   : > { %311 = vst [vmem:[%s6220_s23 + $0x10] sm:$0xf] (%p35_p3), %v310_v4  ;;  %v312_v5 = vld [vmem:[%s6216_s22 + $0x28] sm:$0xf] (%p35_p3)  ;;  %v314_v6 = vld [vmem:[%s6216_s22 + $0x30] sm:$0xf] (%p35_p3) }
  0x15   : > { %v316_v7 = vld [vmem:[%s6216_s22 + $0x38] sm:$0xf]  ;;  %313 = vst [vmem:[%s6220_s23 + $0x14] sm:$0xf] %v312_v5  ;;  %315 = vst [vmem:[%s6220_s23 + $0x18] sm:$0xf] %v314_v6 }
  0x16   : > { %317 = vst [vmem:[%s6220_s23 + $0x1c] sm:$0xf] %v316_v7  ;;  %v318_v8 = vld [vmem:[%s6216_s22 + $0x40] sm:$0xf]  ;;  %v320_v9 = vld [vmem:[%s6216_s22 + $0x48] sm:$0xf] }
  0x17   : > { %v322_v10 = vld [vmem:[%s6216_s22 + $0x50] sm:$0xf]  ;;  %319 = vst [vmem:[%s6220_s23 + $0x20] sm:$0xf] %v318_v8  ;;  %321 = vst [vmem:[%s6220_s23 + $0x24] sm:$0xf] %v320_v9 }
  0x18   : > { %323 = vst [vmem:[%s6220_s23 + $0x28] sm:$0xf] %v322_v10  ;;  %v324_v11 = vld [vmem:[%s6216_s22 + $0x58] sm:$0xf]  ;;  %v326_v12 = vld [vmem:[%s6216_s22 + $0x60] sm:$0xf] }
  0x19   : > { %v328_v13 = vld [vmem:[%s6216_s22 + $0x68] sm:$0xf]  ;;  %325 = vst [vmem:[%s6220_s23 + $0x2c] sm:$0xf] %v324_v11  ;;  %327 = vst [vmem:[%s6220_s23 + $0x30] sm:$0xf] %v326_v12 }
  0x1a   : > { %329 = vst [vmem:[%s6220_s23 + $0x34] sm:$0xf] %v328_v13  ;;  %v330_v14 = vld [vmem:[%s6216_s22 + $0x70] sm:$0xf]  ;;  %v332_v15 = vld [vmem:[%s6216_s22 + $0x78] sm:$0xf] }
  0x1b   : > { %v334_v16 = vld [vmem:[%s6216_s22 + $0x80] sm:$0xf]  ;;  %331 = vst [vmem:[%s6220_s23 + $0x38] sm:$0xf] %v330_v14  ;;  %333 = vst [vmem:[%s6220_s23 + $0x3c] sm:$0xf] %v332_v15 }
  0x1c   : > { %335 = vst [vmem:[%s6220_s23 + $0x40] sm:$0xf] %v334_v16  ;;  %v336_v17 = vld [vmem:[%s6216_s22 + $0x88] sm:$0xf]  ;;  %v338_v18 = vld [vmem:[%s6216_s22 + $0x90] sm:$0xf] }
  0x1d   : > { %v340_v19 = vld [vmem:[%s6216_s22 + $0x98] sm:$0xf]  ;;  %337 = vst [vmem:[%s6220_s23 + $0x44] sm:$0xf] %v336_v17  ;;  %339 = vst [vmem:[%s6220_s23 + $0x48] sm:$0xf] %v338_v18 }
  0x1e   : > { %341 = vst [vmem:[%s6220_s23 + $0x4c] sm:$0xf] %v340_v19  ;;  %v342_v20 = vld [vmem:[%s6216_s22 + $0xa0] sm:$0xf]  ;;  %v344_v21 = vld [vmem:[%s6216_s22 + $0xa8] sm:$0xf] }
  0x1f   : > { %v346_v22 = vld [vmem:[%s6216_s22 + $0xb0] sm:$0xf]  ;;  %343 = vst [vmem:[%s6220_s23 + $0x50] sm:$0xf] %v342_v20  ;;  %345 = vst [vmem:[%s6220_s23 + $0x54] sm:$0xf] %v344_v21 }
  0x20   : > { %347 = vst [vmem:[%s6220_s23 + $0x58] sm:$0xf] %v346_v22  ;;  %v348_v23 = vld [vmem:[%s6216_s22 + $0xb8] sm:$0xf]  ;;  %v350_v24 = vld [vmem:[%s6216_s22 + $0xc0] sm:$0xf] }
  0x21   : > { %v352_v25 = vld [vmem:[%s6216_s22 + $0xc8] sm:$0xf]  ;;  %349 = vst [vmem:[%s6220_s23 + $0x5c] sm:$0xf] %v348_v23  ;;  %351 = vst [vmem:[%s6220_s23 + $0x60] sm:$0xf] %v350_v24 }
  0x22   : > { %353 = vst [vmem:[%s6220_s23 + $0x64] sm:$0xf] %v352_v25  ;;  %v354_v26 = vld [vmem:[%s6216_s22 + $0xd0] sm:$0xf]  ;;  %v356_v27 = vld [vmem:[%s6216_s22 + $0xd8] sm:$0xf] }
  0x23   : > { %v358_v28 = vld [vmem:[%s6216_s22 + $0xe0] sm:$0xf]  ;;  %355 = vst [vmem:[%s6220_s23 + $0x68] sm:$0xf] %v354_v26  ;;  %357 = vst [vmem:[%s6220_s23 + $0x6c] sm:$0xf] %v356_v27 }
  0x24   : > { %359 = vst [vmem:[%s6220_s23 + $0x70] sm:$0xf] %v358_v28  ;;  %v360_v29 = vld [vmem:[%s6216_s22 + $0xe8] sm:$0xf]  ;;  %v362_v30 = vld [vmem:[%s6216_s22 + $0xf0] sm:$0xf] }
  0x25   : > { %v364_v31 = vld [vmem:[%s6216_s22 + $0xf8] sm:$0xf]  ;;  %361 = vst [vmem:[%s6220_s23 + $0x74] sm:$0xf] %v360_v29  ;;  %363 = vst [vmem:[%s6220_s23 + $0x78] sm:$0xf] %v362_v30 }
  0x26   : > { %365 = vst [vmem:[%s6220_s23 + $0x7c] sm:$0xf] %v364_v31  ;;  %v366_v32 = vld [vmem:[%s6216_s22 + $0x100] sm:$0xf]  ;;  %v368_v33 = vld [vmem:[%s6216_s22 + $0x108] sm:$0xf] }
  0x27   : > { %v370_v34 = vld [vmem:[%s6216_s22 + $0x110] sm:$0xf]  ;;  %367 = vst [vmem:[%s6220_s23 + $0x80] sm:$0xf] %v366_v32  ;;  %369 = vst [vmem:[%s6220_s23 + $0x84] sm:$0xf] %v368_v33 }
  0x28   : > { %371 = vst [vmem:[%s6220_s23 + $0x88] sm:$0xf] %v370_v34  ;;  %v372_v35 = vld [vmem:[%s6216_s22 + $0x118] sm:$0xf]  ;;  %v374_v36 = vld [vmem:[%s6216_s22 + $0x120] sm:$0xf] }
  0x29   : > { %v376_v37 = vld [vmem:[%s6216_s22 + $0x128] sm:$0xf]  ;;  %373 = vst [vmem:[%s6220_s23 + $0x8c] sm:$0xf] %v372_v35  ;;  %375 = vst [vmem:[%s6220_s23 + $0x90] sm:$0xf] %v374_v36 }
  0x2a   : > { %377 = vst [vmem:[%s6220_s23 + $0x94] sm:$0xf] %v376_v37  ;;  %v378_v38 = vld [vmem:[%s6216_s22 + $0x130] sm:$0xf]  ;;  %v380_v39 = vld [vmem:[%s6216_s22 + $0x138] sm:$0xf] }
  0x2b   : > { %v382_v40 = vld [vmem:[%s6216_s22 + $0x140] sm:$0xf]  ;;  %379 = vst [vmem:[%s6220_s23 + $0x98] sm:$0xf] %v378_v38  ;;  %381 = vst [vmem:[%s6220_s23 + $0x9c] sm:$0xf] %v380_v39 }
  0x2c   : > { %383 = vst [vmem:[%s6220_s23 + $0xa0] sm:$0xf] %v382_v40  ;;  %v384_v41 = vld [vmem:[%s6216_s22 + $0x148] sm:$0xf]  ;;  %v386_v42 = vld [vmem:[%s6216_s22 + $0x150] sm:$0xf] }
  0x2d   : > { %v388_v43 = vld [vmem:[%s6216_s22 + $0x158] sm:$0xf]  ;;  %385 = vst [vmem:[%s6220_s23 + $0xa4] sm:$0xf] %v384_v41  ;;  %387 = vst [vmem:[%s6220_s23 + $0xa8] sm:$0xf] %v386_v42 }
  0x2e   : > { %389 = vst [vmem:[%s6220_s23 + $0xac] sm:$0xf] %v388_v43  ;;  %v390_v44 = vld [vmem:[%s6216_s22 + $0x160] sm:$0xf]  ;;  %v392_v45 = vld [vmem:[%s6216_s22 + $0x168] sm:$0xf] }
  0x2f   : > { %v394_v46 = vld [vmem:[%s6216_s22 + $0x170] sm:$0xf]  ;;  %391 = vst [vmem:[%s6220_s23 + $0xb0] sm:$0xf] %v390_v44  ;;  %393 = vst [vmem:[%s6220_s23 + $0xb4] sm:$0xf] %v392_v45 }
  0x30   : > { %395 = vst [vmem:[%s6220_s23 + $0xb8] sm:$0xf] %v394_v46  ;;  %v396_v47 = vld [vmem:[%s6216_s22 + $0x178] sm:$0xf]  ;;  %v398_v48 = vld [vmem:[%s6216_s22 + $0x180] sm:$0xf] }
  0x31   : > { %v400_v49 = vld [vmem:[%s6216_s22 + $0x188] sm:$0xf]  ;;  %397 = vst [vmem:[%s6220_s23 + $0xbc] sm:$0xf] %v396_v47  ;;  %399 = vst [vmem:[%s6220_s23 + $0xc0] sm:$0xf] %v398_v48 }
  0x32   : > { %401 = vst [vmem:[%s6220_s23 + $0xc4] sm:$0xf] %v400_v49  ;;  %v402_v50 = vld [vmem:[%s6216_s22 + $0x190] sm:$0xf]  ;;  %v404_v51 = vld [vmem:[%s6216_s22 + $0x198] sm:$0xf] }
  0x33   : > { %v406_v52 = vld [vmem:[%s6216_s22 + $0x1a0] sm:$0xf]  ;;  %403 = vst [vmem:[%s6220_s23 + $0xc8] sm:$0xf] %v402_v50  ;;  %405 = vst [vmem:[%s6220_s23 + $0xcc] sm:$0xf] %v404_v51 }
  0x34   : > { %407 = vst [vmem:[%s6220_s23 + $0xd0] sm:$0xf] %v406_v52  ;;  %v408_v53 = vld [vmem:[%s6216_s22 + $0x1a8] sm:$0xf]  ;;  %v410_v54 = vld [vmem:[%s6216_s22 + $0x1b0] sm:$0xf] }
  0x35   : > { %v412_v55 = vld [vmem:[%s6216_s22 + $0x1b8] sm:$0xf]  ;;  %409 = vst [vmem:[%s6220_s23 + $0xd4] sm:$0xf] %v408_v53  ;;  %411 = vst [vmem:[%s6220_s23 + $0xd8] sm:$0xf] %v410_v54 }
  0x36   : > { %413 = vst [vmem:[%s6220_s23 + $0xdc] sm:$0xf] %v412_v55  ;;  %v414_v56 = vld [vmem:[%s6216_s22 + $0x1c0] sm:$0xf]  ;;  %v416_v57 = vld [vmem:[%s6216_s22 + $0x1c8] sm:$0xf] }
  0x37   : > { %v418_v58 = vld [vmem:[%s6216_s22 + $0x1d0] sm:$0xf]  ;;  %415 = vst [vmem:[%s6220_s23 + $0xe0] sm:$0xf] %v414_v56  ;;  %417 = vst [vmem:[%s6220_s23 + $0xe4] sm:$0xf] %v416_v57 }
  0x38   : > { %419 = vst [vmem:[%s6220_s23 + $0xe8] sm:$0xf] %v418_v58  ;;  %v420_v59 = vld [vmem:[%s6216_s22 + $0x1d8] sm:$0xf]  ;;  %v422_v60 = vld [vmem:[%s6216_s22 + $0x1e0] sm:$0xf] }
  0x39   : > { %v424_v61 = vld [vmem:[%s6216_s22 + $0x1e8] sm:$0xf]  ;;  %421 = vst [vmem:[%s6220_s23 + $0xec] sm:$0xf] %v420_v59  ;;  %423 = vst [vmem:[%s6220_s23 + $0xf0] sm:$0xf] %v422_v60 }
  0x3a   : > { %425 = vst [vmem:[%s6220_s23 + $0xf4] sm:$0xf] %v424_v61  ;;  %v426_v62 = vld [vmem:[%s6216_s22 + $0x1f0] sm:$0xf]  ;;  %v428_v63 = vld [vmem:[%s6216_s22 + $0x1f8] sm:$0xf] }
  0x3b   : > { %427 = vst [vmem:[%s6220_s23 + $0xf8] sm:$0xf] %v426_v62  ;;  %429 = vst [vmem:[%s6220_s23 + $0xfc] sm:$0xf] %v428_v63 }
  0x3c PF: > { %p4547_p5 = scmp.ge.s32.totalorder %s6127_s11, 1  ;;  %p579_p6 = scmp.lt.s32.totalorder %s6127_s11, 3 }
  0x3e   : > { %p580_p7 = pnand %p4547_p5, %p579_p6 }
  0x3f   : > { %v5933_v0 = vld [vmem:[%s7417_s1 + $0x20] sm:$0xff] (!%p580_p7)   ;;  %v6129_v1 = vmov (!%p580_p7), 0.0   ;;  %v5934_v2 = vld [vmem:[%s7417_s1 + $0x28] sm:$0xff] (!%p580_p7)   ;;  %s586_s28 = sand.u32 (!%p580_p7), 1, %s6119_s30   ;;  %vm6130_vm0 = vmmov (!%p580_p7), 0   ;;  %v5935_v3 = vld [vmem:[%s7417_s1 + $0x30] sm:$0xff] (!%p580_p7)  }
  0x40   : > { %583 = sbr.rel (%p580_p7) target bundleno = 1463 (0x5b7), region = 93  ;;  %5310 = vmatprep.subr.bf16.mxu0 (!%p580_p7), %v6129_v1  ;;  %5838 = vmatprep.subr.bf16.mxu1 (!%p580_p7), %v6129_v1  ;;  %s4548_s29 = sshll.u32 (!%p580_p7), %s586_s28, 8  ;;  %v5936_v4 = vld [vmem:[%s7417_s1 + $0x38] sm:$0xff] (!%p580_p7)   ;;  %vm888_vm1 = vcmask (!%p580_p7), 523264   ;;  %v5939_v7 = vld [vmem:[%s7417_s1] sm:$0xff] (!%p580_p7)   ;;  %v5942_v8 = vld [vmem:[%s7417_s1 + $0x8] sm:$0xff] (!%p580_p7)  }
  0x41   : > { %5311 = vmatpush3.bf16.msra.mxu0 (!%p580_p7), %v5933_v0  ;;  %5842 = vmatpush3.bf16.msra.mxu1 (!%p580_p7), %v5933_v0  ;;  %s6365_s14 = scalar_lea.vmem (!%p580_p7), [#allocation2], %s4548_s29  ;;  %v5945_v11 = vld [vmem:[%s7417_s1 + $0x10] sm:$0xff] (!%p580_p7)   ;;  %v5958_v12 = vld [vmem:[%s7417_s1 + $0x40] sm:$0xff] (!%p580_p7)   ;;  %v5948_v13 = vld [vmem:[%s7417_s1 + $0x18] sm:$0xff] (!%p580_p7)   ;;  %vm2914_vm2 = vcmask (!%p580_p7), 130048   ;;  %vm4037_vm3 = vcmask (!%p580_p7), 261120  }
  0x42   : > { %5312 = vmatprep.subr.bf16.mxu0 (!%p580_p7), %v6129_v1  ;;  %5839 = vmatprep.subr.bf16.mxu1 (!%p580_p7), %v6129_v1  ;;  %v5937_v5 = vld [vmem:[%s6365_s14 + $0x4] sm:$0xff] (!%p580_p7)   ;;  %v5940_v9 = vld [vmem:[%s6365_s14 + $0xc] sm:$0xff] (!%p580_p7)   ;;  %v5943_v14 = vld [vmem:[%s6365_s14 + $0x14] sm:$0xff] (!%p580_p7)   ;;  %p620_p8 = scmp.lt.s32.totalorder (!%p580_p7), %s4541_s12, 1 }
  0x43   : > { %5318 = vmatprep.mubr.msk.bf16.mxu0 (!%p580_p7), %vm6130_vm0, %v6129_v1  ;;  %5402 = vmatprep.mubr.msk.bf16.mxu1 (!%p580_p7), %vm6130_vm0, %v6129_v1  ;;  %v5938_v6 = vld [vmem:[%s6365_s14 + $0xc4] sm:$0xff] (!%p580_p7)   ;;  %v5941_v10 = vld [vmem:[%s6365_s14 + $0xcc] sm:$0xff] (!%p580_p7)   ;;  %v5944_v15 = vld [vmem:[%s6365_s14 + $0xd4] sm:$0xff] (!%p580_p7)  }
  0x44   : > { %v5946_v16 = vld [vmem:[%s6365_s14 + $0x1c] ss:$8 sps:$4 sm:$0xff] (!%p580_p7)   ;;  %v5972_v18 = vld [vmem:[%s7417_s1 + $0x48] sm:$0xff] (!%p580_p7)   ;;  %v5984_v23 = vld [vmem:[%s7417_s1 + $0x50] sm:$0xff] (!%p580_p7)  }
  0x45   : > { %5313 = vmatpush3.bf16.msra.mxu0 (!%p580_p7), %v5934_v2  ;;  %5843 = vmatpush3.bf16.msra.mxu1 (!%p580_p7), %v5934_v2  ;;  %v5947_v17 = vld [vmem:[%s6365_s14 + $0xdc] ss:$0 sps:$4 sm:$0xff] (!%p580_p7)   ;;  %v5949_v19 = vld [vmem:[%s6365_s14 + $0x28] sm:$0xff] (!%p580_p7)   ;;  %v5950_v20 = vld [vmem:[%s6365_s14] sm:$0xff] (!%p580_p7)  }
  0x46   : > { %5314 = vmatprep.subr.bf16.mxu0 (!%p580_p7), %v6129_v1  ;;  %5840 = vmatprep.subr.bf16.mxu1 (!%p580_p7), %v6129_v1  ;;  %v5951_v21 = vld [vmem:[%s7417_s1 + $0x60] sm:$0xff] (!%p580_p7)   ;;  %v5965_v22 = vld [vmem:[%s7417_s1 + $0x68] sm:$0xff] (!%p580_p7)   ;;  %v5952_v24 = vld [vmem:[%s6365_s14 + $0x30] sm:$0xff] (!%p580_p7)  }
  0x47   : > { %v5953_v25 = vld [vmem:[%s6365_s14 + $0x8] sm:$0xff]   ;;  %v5979_v26 = vld [vmem:[%s7417_s1 + $0x70] sm:$0xff]   ;;  %v5989_v27 = vld [vmem:[%s7417_s1 + $0x58] sm:$0xff]   ;;  %s7430_s12 = smov (!%p620_p8, %s4541_s12), 1 }
  0x48   : > { %v5954_v28 = vld [vmem:[%s6365_s14 + $0x38] sm:$0xff]   ;;  %v5955_v29 = vld [vmem:[%s6365_s14 + $0x10] sm:$0xff]   ;;  %v5956_v31 = vld [vmem:[%s6365_s14 + $0x44] sm:$0xff]   ;;  %s4549_s20 = sshll.u32 %s7430_s12, 3 }
  0x49   : > { %5315 = vmatpush3.bf16.msra.mxu0 %v5935_v3  ;;  %5844 = vmatpush3.bf16.msra.mxu1 %v5935_v3  ;;  %v5994_v30 = vld [vmem:[%s7417_s1 + $0x78] sm:$0xff]   ;;  %v5959_v33 = vld [vmem:[%s6365_s14 + $0x4c] sm:$0xff]   ;;  %v5960_v34 = vld [vmem:[%s6365_s14 + $0x24] sm:$0xff]   ;;  %s623_s25 = scalar_lea.vmem %s7425_s9, %s4549_s20 }
  0x4a   : > { %5316 = vmatprep.subr.bf16.mxu0 %v6129_v1  ;;  %5841 = vmatprep.subr.bf16.mxu1 %v6129_v1  ;;  %v5957_v32 = vld [vmem:[%s6365_s14 + $0x18] ss:$8 sps:$4 sm:$0xff]   ;;  %v5962_v36 = vld [vmem:[%s6365_s14 + $0x2c] sm:$0xff]   ;;  %v5963_v37 = vld [vmem:[%s6365_s14 + $0x5c] ss:$8 sps:$4 sm:$0xff]  }
  0x4b   : > { %v5961_v35 = vld [vmem:[%s6365_s14 + $0x54] sm:$0xff]   ;;  %v5966_v39 = vld [vmem:[%s6365_s14 + $0x68] sm:$0xff]   ;;  %v5967_v40 = vld [vmem:[%s6365_s14 + $0x40] sm:$0xff]  }
  0x4c   : > { %v5964_v38 = vld [vmem:[%s6365_s14 + $0x34] sm:$0xff]   ;;  %v5969_v42 = vld [vmem:[%s6365_s14 + $0x48] sm:$0xff]   ;;  %v5980_v51 = vld [vmem:[%s6365_s14 + $0x9c] ss:$8 sps:$4 sm:$0xff]  }
  0x4d   : > { %5317 = vmatpush3.bf16.msra.mxu0 %v5936_v4  ;;  %5845 = vmatpush3.bf16.msra.mxu1 %v5936_v4  ;;  %v5968_v41 = vld [vmem:[%s6365_s14 + $0x70] sm:$0xff]   ;;  %v5970_v43 = vld [vmem:[%s6365_s14 + $0x78] sm:$0xff]   ;;  %v5973_v45 = vld [vmem:[%s6365_s14 + $0x84] sm:$0xff]  }
  0x4e   : > { %5418 = vmatprep.subr.bf16.mxu1 %v6129_v1  ;;  %5526 = vmatprep.subr.bf16.mxu0 %v6129_v1  ;;  %v5971_v44 = vld [vmem:[%s6365_s14 + $0x50] sm:$0xff]   ;;  %v5974_v46 = vld [vmem:[%s6365_s14 + $0x58] ss:$8 sps:$4 sm:$0xff]   ;;  %v5976_v48 = vld [vmem:[%s6365_s14 + $0x64] sm:$0xff]  }
  0x4f   : > { %v5975_v47 = vld [vmem:[%s6365_s14 + $0x8c] sm:$0xff]   ;;  %v5977_v49 = vld [vmem:[%s6365_s14 + $0x94] sm:$0xff]   ;;  %v5983_v54 = vld [vmem:[%s6365_s14 + $0x80] sm:$0xff]  }
  0x50   : > { %5319 = vmatmul.mubr.msk.bf16.vlgmr.msra.gmra.mrb[0].mxu0 %vm888_vm1, %v5937_v5  ;;  %5403 = vmatmul.mubr.msk.bf16.vlgmr.msra.gmra.mrb[0].mxu1 %vm888_vm1, %v5938_v6  ;;  %v5978_v50 = vld [vmem:[%s6365_s14 + $0x6c] sm:$0xff]   ;;  %v5981_v52 = vld [vmem:[%s6365_s14 + $0x74] sm:$0xff]   ;;  %v5991_v60 = vld [vmem:[%s6365_s14 + $0x20] sm:$0xff]  }
  0x51   : > { %5419 = vmatpush3.bf16.msra.mxu1 %v5939_v7  ;;  %5322 = vmatprep.mubr.msk.bf16.mxu0 %vm6130_vm0, %v6129_v1  ;;  %v5982_v53 = vld [vmem:[%s6365_s14 + $0xa8] sm:$0xff]   ;;  %v5985_v55 = vld [vmem:[%s6365_s14 + $0xb0] sm:$0xff]   ;;  %v5987_v57 = vld [vmem:[%s6365_s14 + $0xb8] sm:$0xff]  }
  0x52   : > { %5406 = vmatprep.mubr.msk.bf16.mxu1 %vm6130_vm0, %v6129_v1  ;;  %5420 = vmatprep.subr.bf16.mxu1 %v6129_v1  ;;  %v5986_v56 = vld [vmem:[%s6365_s14 + $0x88] sm:$0xff]   ;;  %v5988_v58 = vld [vmem:[%s6365_s14 + $0x90] sm:$0xff]   ;;  %v5990_v59 = vld [vmem:[%s6365_s14 + $0x98] ss:$8 sps:$4 sm:$0xff]  }
  0x53   : > { %5527 = vmatpush3.bf16.msra.mxu0 %v5958_v12  ;;  %v5992_v61 = vld [vmem:[%s6365_s14 + $0xa4] sm:$0xff]   ;;  %v5995_v63 = vld [vmem:[%s6365_s14 + $0xac] sm:$0xff]   ;;  %v5997_v2 = vld [vmem:[%s6365_s14 + $0xb4] sm:$0xff]  }
  0x54   : > { %5528 = vmatprep.subr.bf16.mxu0 %v6129_v1  ;;  %v5993_v62 = vld [vmem:[%s6365_s14 + $0x28] sm:$0xff]   ;;  %v5996_v0 = vld [vmem:[%s6365_s14 + $0x30] sm:$0xff]   ;;  %v5998_v3 = vld [vmem:[%s6365_s14 + $0x38] ss:$8 sps:$4 sm:$0xff]  }
  0x55   : > { %5421 = vmatpush3.bf16.msra.mxu1 %v5942_v8  ;;  %v6029_v4 = vld [vmem:[%s7419_s3 + $0x8] sm:$0xff]   ;;  %v5999_v5 = vld [vmem:[%s6365_s14 + $0xc0] sm:$0xff]   ;;  %v6003_v12 = vld [vmem:[%s6365_s14 + $0xd0] sm:$0xff]  }
  0x56   : > { %5422 = vmatprep.subr.bf16.mxu1 %v6129_v1  ;;  %v6000_v6 = vld [vmem:[%s6365_s14 + $0x44] sm:$0xff]   ;;  %v6002_v8 = vld [vmem:[%s6365_s14 + $0x4c] sm:$0xff]  }
  0x57   : > { %5529 = vmatpush3.bf16.msra.mxu0 %v5972_v18  ;;  %v6001_v7 = vld [vmem:[%s6365_s14 + $0xc8] sm:$0xff]  }
  0x58   : > { %5323 = vmatmul.mubr.msk.bf16.gmra.mrb[4].mxu0 %vm888_vm1, %v5940_v9  ;;  %5407 = vmatmul.mubr.msk.bf16.gmra.mrb[4].mxu1 %vm888_vm1, %v5941_v10 }
  0x59   : > { %5326 = vmatprep.mubr.msk.bf16.mxu0 %vm6130_vm0, %v6129_v1  ;;  %5410 = vmatprep.mubr.msk.bf16.mxu1 %vm6130_vm0, %v6129_v1 }
  0x5a   : > { %5423 = vmatpush3.bf16.msra.mxu1 %v5945_v11  ;;  %5530 = vmatprep.subr.bf16.mxu0 %v6129_v1 }
  0x5b   : > { %5424 = vmatprep.subr.bf16.mxu1 %v6129_v1  ;;  %5531 = vmatpush3.bf16.msra.mxu0 %v5984_v23  ;;  %v6006_v23 = vld [vmem:[%s6365_s14 + $0x60] sm:$0xff]  }
  0x5c   : > { %5532 = vmatprep.subr.bf16.mxu0 %v6129_v1 }
  0x5e   : > { %5425 = vmatpush3.bf16.msra.mxu1 %v5948_v13  ;;  %v6004_v13 = vld [vmem:[%s6365_s14 + $0x54] sm:$0xff]  }
  0x5f   : > { %5634 = vmatprep.subr.bf16.mxu1 %v6129_v1  ;;  %5533 = vmatpush3.bf16.msra.mxu0 %v5989_v27 }
  0x60   : > { %5327 = vmatmul.mubr.msk.bf16.gmra.mrb[8].mxu0 %vm888_vm1, %v5943_v14  ;;  %5411 = vmatmul.mubr.msk.bf16.gmra.mrb[8].mxu1 %vm888_vm1, %v5944_v15 }
  0x61   : > { %5330 = vmatprep.mubr.msk.bf16.mxu0 %vm6130_vm0, %v6129_v1  ;;  %5414 = vmatprep.mubr.msk.bf16.mxu1 %vm6130_vm0, %v6129_v1 }
  0x62   : > { %5742 = vmatprep.subr.bf16.mxu0 %v6029_v4 }
  0x68   : > { %5331 = vmatmul.mubr.msk.bf16.gmra.mrb[12].mxu0 %vm888_vm1, %v5946_v16  ;;  %5415 = vmatmul.mubr.msk.bf16.gmra.mrb[12].mxu1 %vm888_vm1, %v5947_v17 }
  0x69   : > { %5334 = vmatprep.mubr.msk.bf16.mxu0 %vm6130_vm0, %v6129_v1  ;;  %5426 = vmatprep.mubr.msk.bf16.mxu1 %vm6130_vm0, %v6129_v1 }
  0x70   : > { %5335 = vmatmul.mubr.msk.bf16.gmra.mrb[16].mxu0 %vm888_vm1, %v5949_v19  ;;  %5427 = vmatmul.mubr.msk.bf16.vlgmr.msra.gmra.mrb[16].mxu1 %vm888_vm1, %v5950_v20 }
  0x71   : > { %5635 = vmatpush3.bf16.msra.mxu1 %v5951_v21  ;;  %5338 = vmatprep.mubr.msk.bf16.mxu0 %vm6130_vm0, %v6129_v1 }
  0x72   : > { %5430 = vmatprep.mubr.msk.bf16.mxu1 %vm6130_vm0, %v6129_v1  ;;  %5636 = vmatprep.subr.bf16.mxu1 %v6129_v1 }
  0x75   : > { %5637 = vmatpush3.bf16.msra.mxu1 %v5965_v22  ;;  %v6005_v22 = vld [vmem:[%s6365_s14 + $0xd8] ss:$0 sps:$4 sm:$0xff]  }
  0x76   : > { %5638 = vmatprep.subr.bf16.mxu1 %v6129_v1 }
  0x78   : > { %5339 = vmatmul.mubr.msk.bf16.gmra.mrb[20].mxu0 %vm888_vm1, %v5952_v24  ;;  %5431 = vmatmul.mubr.msk.bf16.gmra.mrb[20].mxu1 %vm888_vm1, %v5953_v25 }
  0x79   : > { %5342 = vmatprep.mubr.msk.bf16.mxu0 %vm6130_vm0, %v6129_v1  ;;  %5434 = vmatprep.mubr.msk.bf16.mxu1 %vm6130_vm0, %v6129_v1 }
  0x7a   : > { %5639 = vmatpush3.bf16.msra.mxu1 %v5979_v26 }
  0x7b   : > { %5640 = vmatprep.subr.bf16.mxu1 %v6129_v1 }
  0x7e   : > { %5641 = vmatpush3.bf16.msra.mxu1 %v5994_v30 }
  0x80   : > { %5343 = vmatmul.mubr.msk.bf16.gmra.mrb[24].mxu0 %vm888_vm1, %v5954_v28  ;;  %5435 = vmatmul.mubr.msk.bf16.gmra.mrb[24].mxu1 %vm888_vm1, %v5955_v29 }
  0x81   : > { %5346 = vmatprep.mubr.msk.bf16.mxu0 %vm6130_vm0, %v6129_v1  ;;  %5438 = vmatprep.mubr.msk.bf16.mxu1 %vm6130_vm0, %v6129_v1 }
  0x88   : > { %5347 = vmatmul.mubr.msk.bf16.gmra.mrb[28].mxu0 %vm888_vm1, %v5956_v31  ;;  %5439 = vmatmul.mubr.msk.bf16.gmra.mrb[28].mxu1 %vm888_vm1, %v5957_v32  ;;  %v6007_v32 = vld [vmem:[%s6365_s14 + $0x68] sm:$0xff]  }
  0x89   : > { %5350 = vmatprep.mubr.msk.bf16.mxu0 %vm6130_vm0, %v6129_v1  ;;  %5442 = vmatprep.mubr.msk.bf16.mxu1 %vm6130_vm0, %v6129_v1 }
  0x90   : > { %5351 = vmatmul.mubr.msk.bf16.gmra.mrb[32].mxu0 %vm888_vm1, %v5959_v33  ;;  %5443 = vmatmul.mubr.msk.bf16.gmra.mrb[32].mxu1 %vm888_vm1, %v5960_v34  ;;  %v6008_v33 = vld [vmem:[%s6365_s14 + $0x24] sm:$0xff]  }
  0x91   : > { %5354 = vmatprep.mubr.msk.bf16.mxu0 %vm6130_vm0, %v6129_v1  ;;  %5446 = vmatprep.mubr.msk.bf16.mxu1 %vm6130_vm0, %v6129_v1 }
  0x98   : > { %5355 = vmatmul.mubr.msk.bf16.gmra.mrb[36].mxu0 %vm888_vm1, %v5961_v35  ;;  %5447 = vmatmul.mubr.msk.bf16.gmra.mrb[36].mxu1 %vm888_vm1, %v5962_v36 }
  0x99   : > { %5358 = vmatprep.mubr.msk.bf16.mxu0 %vm6130_vm0, %v6129_v1  ;;  %5450 = vmatprep.mubr.msk.bf16.mxu1 %vm6130_vm0, %v6129_v1 }
  0xa0   : > { %5359 = vmatmul.mubr.msk.bf16.gmra.mrb[40].mxu0 %vm888_vm1, %v5963_v37  ;;  %5451 = vmatmul.mubr.msk.bf16.gmra.mrb[40].mxu1 %vm888_vm1, %v5964_v38 }
  0xa1   : > { %5362 = vmatprep.mubr.msk.bf16.mxu0 %vm6130_vm0, %v6129_v1  ;;  %5454 = vmatprep.mubr.msk.bf16.mxu1 %vm6130_vm0, %v6129_v1 }
  0xa8   : > { %5363 = vmatmul.mubr.msk.bf16.gmra.mrb[44].mxu0 %vm888_vm1, %v5966_v39  ;;  %5455 = vmatmul.mubr.msk.bf16.gmra.mrb[44].mxu1 %vm888_vm1, %v5967_v40 }
  0xa9   : > { %5366 = vmatprep.mubr.msk.bf16.mxu0 %vm6130_vm0, %v6129_v1  ;;  %5458 = vmatprep.mubr.msk.bf16.mxu1 %vm6130_vm0, %v6129_v1 }
  0xb0   : > { %5367 = vmatmul.mubr.msk.bf16.gmra.mrb[48].mxu0 %vm888_vm1, %v5968_v41  ;;  %5459 = vmatmul.mubr.msk.bf16.gmra.mrb[48].mxu1 %vm888_vm1, %v5969_v42  ;;  %v6009_v42 = vld [vmem:[%s6365_s14 + $0x70] sm:$0xff]  }
  0xb1   : > { %5370 = vmatprep.mubr.msk.bf16.mxu0 %vm6130_vm0, %v6129_v1  ;;  %5462 = vmatprep.mubr.msk.bf16.mxu1 %vm6130_vm0, %v6129_v1 }
  0xb8   : > { %5371 = vmatmul.mubr.msk.bf16.gmra.mrb[52].mxu0 %vm888_vm1, %v5970_v43  ;;  %5463 = vmatmul.mubr.msk.bf16.gmra.mrb[52].mxu1 %vm888_vm1, %v5971_v44  ;;  %v6010_v43 = vld [vmem:[%s6365_s14 + $0x2c] sm:$0xff]  }
  0xb9   : > { %5374 = vmatprep.mubr.msk.bf16.mxu0 %vm6130_vm0, %v6129_v1  ;;  %5466 = vmatprep.mubr.msk.bf16.mxu1 %vm6130_vm0, %v6129_v1 }
  0xc0   : > { %5375 = vmatmul.mubr.msk.bf16.gmra.mrb[56].mxu0 %vm888_vm1, %v5973_v45  ;;  %5467 = vmatmul.mubr.msk.bf16.gmra.mrb[56].mxu1 %vm888_vm1, %v5974_v46 }
  0xc1   : > { %5378 = vmatprep.mubr.msk.bf16.mxu0 %vm6130_vm0, %v6129_v1  ;;  %5470 = vmatprep.mubr.msk.bf16.mxu1 %vm6130_vm0, %v6129_v1 }
  0xc8   : > { %5379 = vmatmul.mubr.msk.bf16.gmra.mrb[60].mxu0 %vm888_vm1, %v5975_v47  ;;  %5471 = vmatmul.mubr.msk.bf16.gmra.mrb[60].mxu1 %vm888_vm1, %v5976_v48 }
  0xc9   : > { %5382 = vmatprep.mubr.msk.bf16.mxu0 %vm6130_vm0, %v6129_v1  ;;  %5474 = vmatprep.mubr.msk.bf16.mxu1 %vm6130_vm0, %v6129_v1 }
  0xd0   : > { %5383 = vmatmul.mubr.msk.bf16.gmra.mrb[64].mxu0 %vm888_vm1, %v5977_v49  ;;  %5475 = vmatmul.mubr.msk.bf16.gmra.mrb[64].mxu1 %vm888_vm1, %v5978_v50 }
  0xd1   : > { %5386 = vmatprep.mubr.msk.bf16.mxu0 %vm6130_vm0, %v6129_v1  ;;  %5478 = vmatprep.mubr.msk.bf16.mxu1 %vm6130_vm0, %v6129_v1 }
  0xd8   : > { %5387 = vmatmul.mubr.msk.bf16.gmra.mrb[68].mxu0 %vm888_vm1, %v5980_v51  ;;  %5479 = vmatmul.mubr.msk.bf16.gmra.mrb[68].mxu1 %vm888_vm1, %v5981_v52 }
  0xd9   : > { %5390 = vmatprep.mubr.msk.bf16.mxu0 %vm6130_vm0, %v6129_v1  ;;  %5482 = vmatprep.mubr.msk.bf16.mxu1 %vm6130_vm0, %v6129_v1 }
  0xe0   : > { %5391 = vmatmul.mubr.msk.bf16.gmra.mrb[72].mxu0 %vm888_vm1, %v5982_v53  ;;  %5483 = vmatmul.mubr.msk.bf16.gmra.mrb[72].mxu1 %vm888_vm1, %v5983_v54  ;;  %v6011_v53 = vld [vmem:[%s6365_s14 + $0x78] ss:$8 sps:$4 sm:$0xff]  }
  0xe1   : > { %5394 = vmatprep.mubr.msk.bf16.mxu0 %vm6130_vm0, %v6129_v1  ;;  %5486 = vmatprep.mubr.msk.bf16.mxu1 %vm6130_vm0, %v6129_v1  ;;  %v6012_v54 = vld [vmem:[%s6365_s14 + $0x34] sm:$0xff]  }
  0xe8   : > { %5395 = vmatmul.mubr.msk.bf16.gmra.mrb[76].mxu0 %vm888_vm1, %v5985_v55  ;;  %5487 = vmatmul.mubr.msk.bf16.gmra.mrb[76].mxu1 %vm888_vm1, %v5986_v56 }
  0xe9   : > { %5398 = vmatprep.mubr.msk.bf16.mxu0 %vm6130_vm0, %v6129_v1  ;;  %5490 = vmatprep.mubr.msk.bf16.mxu1 %vm6130_vm0, %v6129_v1 }
  0xf0   : > { %5399 = vmatmul.mubr.msk.bf16.gmra.mrb[80].mxu0 %vm888_vm1, %v5987_v57  ;;  %5491 = vmatmul.mubr.msk.bf16.gmra.mrb[80].mxu1 %vm888_vm1, %v5988_v58 }
  0xf1   : > { %5494 = vmatprep.mubr.msk.bf16.mxu1 %vm6130_vm0, %v6129_v1  ;;  %5534 = vmatprep.mubr.msk.bf16.mxu0 %vm6130_vm0, %v6129_v1 }
  0xf8   : > { %5495 = vmatmul.mubr.msk.bf16.gmra.mrb[84].mxu1 %vm888_vm1, %v5990_v59  ;;  %5535 = vmatmul.mubr.msk.bf16.vlgmr.msra.gmra.mrb[84].mxu0 %vm888_vm1, %v5991_v60 }
  0xf9   : > { %5498 = vmatprep.mubr.msk.bf16.mxu1 %vm6130_vm0, %v6129_v1  ;;  %5538 = vmatprep.mubr.msk.bf16.mxu0 %vm6130_vm0, %v6129_v1 }
  0xfa   : > { %5743 = vmatpush3.bf16.msra.mxu0 %v6029_v4 }
 0x100   : > { %5499 = vmatmul.mubr.msk.bf16.gmra.mrb[88].mxu1 %vm888_vm1, %v5992_v61  ;;  %5539 = vmatmul.mubr.msk.bf16.gmra.mrb[88].mxu0 %vm888_vm1, %v5993_v62 }
 0x101   : > { %5502 = vmatprep.mubr.msk.bf16.mxu1 %vm6130_vm0, %v6129_v1  ;;  %5542 = vmatprep.mubr.msk.bf16.mxu0 %vm6130_vm0, %v6129_v1 }
 0x108   : > { %5503 = vmatmul.mubr.msk.bf16.gmra.mrb[92].mxu1 %vm888_vm1, %v5995_v63  ;;  %5543 = vmatmul.mubr.msk.bf16.gmra.mrb[92].mxu0 %vm888_vm1, %v5996_v0 }
 0x109   : > { %5506 = vmatprep.mubr.msk.bf16.mxu1 %vm6130_vm0, %v6129_v1  ;;  %5546 = vmatprep.mubr.msk.bf16.mxu0 %vm6130_vm0, %v6129_v1 }
 0x110   : > { %5507 = vmatmul.mubr.msk.bf16.gmra.mrb[96].mxu1 %vm888_vm1, %v5997_v2  ;;  %5547 = vmatmul.mubr.msk.bf16.gmra.mrb[96].mxu0 %vm888_vm1, %v5998_v3  ;;  %v6013_v2 = vld [vmem:[%s6365_s14 + $0x84] sm:$0xff]  }
 0x111   : > { %5510 = vmatprep.mubr.msk.bf16.mxu1 %vm6130_vm0, %v6129_v1  ;;  %5550 = vmatprep.mubr.msk.bf16.mxu0 %vm6130_vm0, %v6129_v1  ;;  %v6014_v3 = vld [vmem:[%s6365_s14 + $0x3c] ss:$8 sps:$4 sm:$0xff]  }
 0x118   : > { %5511 = vmatmul.mubr.msk.bf16.gmra.mrb[100].mxu1 %vm888_vm1, %v5999_v5  ;;  %5551 = vmatmul.mubr.msk.bf16.gmra.mrb[100].mxu0 %vm888_vm1, %v6000_v6 }
 0x119   : > { %5514 = vmatprep.mubr.msk.bf16.mxu1 %vm6130_vm0, %v6129_v1  ;;  %5554 = vmatprep.mubr.msk.bf16.mxu0 %vm6130_vm0, %v6129_v1 }
 0x120   : > { %5515 = vmatmul.mubr.msk.bf16.gmra.mrb[104].mxu1 %vm888_vm1, %v6001_v7  ;;  %5555 = vmatmul.mubr.msk.bf16.gmra.mrb[104].mxu0 %vm888_vm1, %v6002_v8 }
 0x121   : > { %5518 = vmatprep.mubr.msk.bf16.mxu1 %vm6130_vm0, %v6129_v1  ;;  %5558 = vmatprep.mubr.msk.bf16.mxu0 %vm6130_vm0, %v6129_v1 }
 0x123   : > { %v1166_v9 = vpop.f32.mrb[0].mxu1  ;;  %v998_v10 = vpop.f32.mrb[0].mxu0 }
 0x124   : > { %v5404_v11 = vpop.f32.mrb[1].mxu1  ;;  %v5320_v14 = vpop.f32.mrb[1].mxu0 }
 0x125   : > { %v1168_v15 = vpop.f32.mrb[2].mxu1  ;;  %v1001_v16 = vpop.f32.mrb[2].mxu0  ;;  %v6015_v14 = vld [vmem:[%s6365_s14 + $0x8c] sm:$0xff]  }
 0x126   : > { %v5405_v17 = vpop.f32.mrb[3].mxu1  ;;  %v5321_v18 = vpop.f32.mrb[3].mxu0  ;;  %v6016_v15 = vld [vmem:[%s6365_s14 + $0x48] sm:$0xff]  }
 0x128   : > { %5519 = vmatmul.mubr.msk.bf16.gmra.mrb[108].mxu1 %vm888_vm1, %v6003_v12  ;;  %5559 = vmatmul.mubr.msk.bf16.gmra.mrb[108].mxu0 %vm888_vm1, %v6004_v13 }
 0x129   : > { %5522 = vmatprep.mubr.msk.bf16.mxu1 %vm6130_vm0, %v6129_v1  ;;  %5562 = vmatprep.mubr.msk.bf16.mxu0 %vm6130_vm0, %v6129_v1 }
 0x12b   : > { %v1172_v19 = vpop.f32.mrb[4].mxu1  ;;  %v1006_v20 = vpop.f32.mrb[4].mxu0 }
 0x12c   : > { %v5408_v21 = vpop.f32.mrb[5].mxu1  ;;  %v5324_v24 = vpop.f32.mrb[5].mxu0 }
 0x12d   : > { %v1174_v25 = vpop.f32.mrb[6].mxu1  ;;  %v1009_v26 = vpop.f32.mrb[6].mxu0 }
 0x12e   : > { %v5409_v27 = vpop.f32.mrb[7].mxu1  ;;  %v5325_v28 = vpop.f32.mrb[7].mxu0  ;;  %v6017_v25 = vld [vmem:[%s6365_s14 + $0x94] sm:$0xff]  }
 0x130   : > { %5523 = vmatmul.mubr.msk.bf16.gmra.mrb[112].mxu1 %vm888_vm1, %v6005_v22  ;;  %5563 = vmatmul.mubr.msk.bf16.gmra.mrb[112].mxu0 %vm888_vm1, %v6006_v23 }
 0x131   : > { %5566 = vmatprep.mubr.msk.bf16.mxu0 %vm6130_vm0, %v6129_v1  ;;  %5642 = vmatprep.mubr.msk.bf16.mxu1 %vm6130_vm0, %v6129_v1 }
 0x133   : > { %v1178_v29 = vpop.f32.mrb[8].mxu1  ;;  %v1014_v30 = vpop.f32.mrb[8].mxu0 }
 0x134   : > { %v5412_v31 = vpop.f32.mrb[9].mxu1  ;;  %v5328_v34 = vpop.f32.mrb[9].mxu0 }
 0x135   : > { %v1180_v35 = vpop.f32.mrb[10].mxu1  ;;  %v1017_v36 = vpop.f32.mrb[10].mxu0 }
 0x136   : > { %v5413_v37 = vpop.f32.mrb[11].mxu1  ;;  %v5329_v38 = vpop.f32.mrb[11].mxu0 }
 0x137   : > { %v6019_v37 = vld [vmem:[%s6365_s14 + $0xa0] sm:$0xff]   ;;  %v6020_v38 = vld [vmem:[%s6365_s14 + $0x58] sm:$0xff]  }
 0x138   : > { %5567 = vmatmul.mubr.msk.bf16.gmra.mrb[116].mxu0 %vm888_vm1, %v6007_v32  ;;  %5643 = vmatmul.mubr.msk.bf16.vlgmr.msra.gmra.mrb[116].mxu1 %vm888_vm1, %v6008_v33 }
 0x139   : > { %5570 = vmatprep.mubr.msk.bf16.mxu0 %vm6130_vm0, %v6129_v1  ;;  %5646 = vmatprep.mubr.msk.bf16.mxu1 %vm6130_vm0, %v6129_v1 }
 0x13b   : > { %v1184_v39 = vpop.f32.mrb[12].mxu1  ;;  %v1022_v40 = vpop.f32.mrb[12].mxu0 }
 0x13c   : > { %v5416_v41 = vpop.f32.mrb[13].mxu1  ;;  %v5332_v44 = vpop.f32.mrb[13].mxu0 }
 0x13d   : > { %v1186_v45 = vpop.f32.mrb[14].mxu1  ;;  %v6670_v46 = vpop.f32.mrb[14].mxu0 }
 0x13e   : > { %v5417_v47 = vpop.f32.mrb[15].mxu1  ;;  %v5333_v48 = vpop.f32.mrb[15].mxu0 }
 0x140   : > { %5571 = vmatmul.mubr.msk.bf16.gmra.mrb[120].mxu0 %vm888_vm1, %v6009_v42  ;;  %5647 = vmatmul.mubr.msk.bf16.gmra.mrb[120].mxu1 %vm888_vm1, %v6010_v43 }
 0x141   : > { %5574 = vmatprep.mubr.msk.bf16.mxu0 %vm6130_vm0, %v6129_v1  ;;  %5650 = vmatprep.mubr.msk.bf16.mxu1 %vm6130_vm0, %v6129_v1 }
 0x143   : > { %v1445_v49 = vpop.f32.mrb[16].mxu1  ;;  %v6678_v50 = vpop.f32.mrb[16].mxu0 }
 0x144   : > { %v6680_v51 = vadd.f32 %v1445_v49, %v998_v10  ;;  %v5428_v52 = vpop.f32.mrb[17].mxu1  ;;  %v5336_v55 = vpop.f32.mrb[17].mxu0  ;;  %v6021_v49 = vld [vmem:[%s6365_s14 + $0xa8] sm:$0xff]  }
 0x145   : > { %v1448_v56 = vpop.f32.mrb[18].mxu1  ;;  %v6684_v57 = vpop.f32.mrb[18].mxu0 }
 0x146   : > { %v6686_v58 = vadd.f32 %v1448_v56, %v1001_v16  ;;  %v5429_v59 = vpop.f32.mrb[19].mxu1  ;;  %v5337_v60 = vpop.f32.mrb[19].mxu0 }
 0x148   : > { %5575 = vmatmul.mubr.msk.bf16.gmra.mrb[124].mxu0 %vm888_vm1, %v6011_v53  ;;  %5651 = vmatmul.mubr.msk.bf16.gmra.mrb[124].mxu1 %vm888_vm1, %v6012_v54 }
 0x149   : > { %5578 = vmatprep.mubr.msk.bf16.mxu0 %vm6130_vm0, %v6129_v1  ;;  %5654 = vmatprep.mubr.msk.bf16.mxu1 %vm6130_vm0, %v6129_v1 }
 0x14b   : > { %v1453_v61 = vpop.f32.mrb[20].mxu1  ;;  %v6694_v62 = vpop.f32.mrb[20].mxu0 }
 0x14c   : > { %v6696_v63 = vadd.f32 %v1453_v61, %v1006_v20  ;;  %v5432_v0 = vpop.f32.mrb[21].mxu1  ;;  %v5340_v4 = vpop.f32.mrb[21].mxu0 }
 0x14d   : > { %v1456_v5 = vpop.f32.mrb[22].mxu1  ;;  %v6700_v6 = vpop.f32.mrb[22].mxu0  ;;  %v6023_v0 = vld [vmem:[%s6365_s14 + $0xb0] sm:$0xff]  }
 0x14e   : > { %v6702_v7 = vadd.f32 %v1456_v5, %v1009_v26  ;;  %v5433_v8 = vpop.f32.mrb[23].mxu1  ;;  %v5341_v9 = vpop.f32.mrb[23].mxu0  ;;  %v6018_v26 = vld [vmem:[%s6365_s14 + $0x50] sm:$0xff]  }
 0x150   : > { %5579 = vmatmul.mubr.msk.bf16.gmra.mrb[128].mxu0 %vm888_vm1, %v6013_v2  ;;  %5655 = vmatmul.mubr.msk.bf16.gmra.mrb[128].mxu1 %vm888_vm1, %v6014_v3  ;;  %v6024_v2 = vld [vmem:[%s6365_s14 + $0x6c] sm:$0xff]  }
 0x151   : > { %5582 = vmatprep.mubr.msk.bf16.mxu0 %vm6130_vm0, %v6129_v1  ;;  %5658 = vmatprep.mubr.msk.bf16.mxu1 %vm6130_vm0, %v6129_v1 }
 0x153   : > { %v1461_v10 = vpop.f32.mrb[24].mxu1  ;;  %v6710_v11 = vpop.f32.mrb[24].mxu0 }
 0x154   : > { %v6712_v12 = vadd.f32 %v1461_v10, %v1014_v30  ;;  %v5436_v13 = vpop.f32.mrb[25].mxu1  ;;  %v5344_v16 = vpop.f32.mrb[25].mxu0 }
 0x155   : > { %v1464_v17 = vpop.f32.mrb[26].mxu1  ;;  %v1049_v18 = vpop.f32.mrb[26].mxu0 }
 0x156   : > { %v6716_v19 = vadd.f32 %v1464_v17, %v1017_v36  ;;  %v5437_v20 = vpop.f32.mrb[27].mxu1  ;;  %v5345_v21 = vpop.f32.mrb[27].mxu0 }
 0x158   : > { %5583 = vmatmul.mubr.msk.bf16.gmra.mrb[132].mxu0 %vm888_vm1, %v6015_v14  ;;  %5659 = vmatmul.mubr.msk.bf16.gmra.mrb[132].mxu1 %vm888_vm1, %v6016_v15  ;;  %v6025_v14 = vld [vmem:[%s6365_s14 + $0xb8] ss:$8 sps:$4 sm:$0xff]  }
 0x159   : > { %5586 = vmatprep.mubr.msk.bf16.mxu0 %vm6130_vm0, %v6129_v1  ;;  %5662 = vmatprep.mubr.msk.bf16.mxu1 %vm6130_vm0, %v6129_v1  ;;  %v6026_v15 = vld [vmem:[%s6365_s14 + $0x74] sm:$0xff]  }
 0x15b   : > { %v1469_v22 = vpop.f32.mrb[28].mxu1  ;;  %v6724_v23 = vpop.f32.mrb[28].mxu0 }
 0x15c   : > { %v5440_v24 = vpop.f32.mrb[29].mxu1  ;;  %v5348_v27 = vpop.f32.mrb[29].mxu0 }
 0x15d   : > { %v1472_v28 = vpop.f32.mrb[30].mxu1  ;;  %v6728_v29 = vpop.f32.mrb[30].mxu0  ;;  %v6027_v27 = vld [vmem:[%s6365_s14 + $0xc4] sm:$0xff]  }
 0x15e   : > { %v6731_v30 = vadd.f32 %v1472_v28, %v6670_v46  ;;  %v5441_v31 = vpop.f32.mrb[31].mxu1  ;;  %v5349_v32 = vpop.f32.mrb[31].mxu0  ;;  %v6028_v28 = vld [vmem:[%s6365_s14 + $0x7c] ss:$8 sps:$4 sm:$0xff]  }
 0x160   : > { %5587 = vmatmul.mubr.msk.bf16.gmra.mrb[136].mxu0 %vm888_vm1, %v6017_v25  ;;  %5663 = vmatmul.mubr.msk.bf16.gmra.mrb[136].mxu1 %vm888_vm1, %v6018_v26 }
 0x161   : > { %5590 = vmatprep.mubr.msk.bf16.mxu0 %vm6130_vm0, %v6129_v1  ;;  %5666 = vmatprep.mubr.msk.bf16.mxu1 %vm6130_vm0, %v6129_v1 }
 0x163   : > { %v1477_v33 = vpop.f32.mrb[32].mxu1  ;;  %v6739_v34 = vpop.f32.mrb[32].mxu0 }
 0x164   : > { %v6742_v35 = vadd.f32 %v1477_v33, %v6678_v50  ;;  %v5444_v36 = vpop.f32.mrb[33].mxu1  ;;  %v5352_v39 = vpop.f32.mrb[33].mxu0  ;;  %v6022_v50 = vld [vmem:[%s6365_s14 + $0x64] sm:$0xff]  }
 0x165   : > { %v1480_v40 = vpop.f32.mrb[34].mxu1  ;;  %v6746_v41 = vpop.f32.mrb[34].mxu0 }
 0x166   : > { %v6749_v42 = vadd.f32 %v1480_v40, %v6684_v57  ;;  %v5445_v43 = vpop.f32.mrb[35].mxu1  ;;  %v5353_v44 = vpop.f32.mrb[35].mxu0 }
 0x167   : > { %v6031_v43 = vld [vmem:[%s6365_s14 + $0x88] sm:$0xff]  }
 0x168   : > { %5591 = vmatmul.mubr.msk.bf16.gmra.mrb[140].mxu0 %vm888_vm1, %v6019_v37  ;;  %5667 = vmatmul.mubr.msk.bf16.gmra.mrb[140].mxu1 %vm888_vm1, %v6020_v38 }
 0x169   : > { %5594 = vmatprep.mubr.msk.bf16.mxu0 %vm6130_vm0, %v6129_v1  ;;  %5670 = vmatprep.mubr.msk.bf16.mxu1 %vm6130_vm0, %v6129_v1 }
 0x16b   : > { %v1485_v45 = vpop.f32.mrb[36].mxu1  ;;  %v6757_v46 = vpop.f32.mrb[36].mxu0 }
 0x16c   : > { %v6760_v47 = vadd.f32 %v1485_v45, %v6694_v62  ;;  %v5448_v48 = vpop.f32.mrb[37].mxu1  ;;  %v5356_v52 = vpop.f32.mrb[37].mxu0 }
 0x16d   : > { %v1488_v53 = vpop.f32.mrb[38].mxu1  ;;  %v6764_v54 = vpop.f32.mrb[38].mxu0 }
 0x16e   : > { %v6767_v55 = vadd.f32 %v1488_v53, %v6700_v6  ;;  %v5449_v56 = vpop.f32.mrb[39].mxu1  ;;  %v5357_v57 = vpop.f32.mrb[39].mxu0 }
 0x16f   : > { %v6032_v57 = vld [vmem:[%s6365_s14 + $0xd4] sm:$0xff]  }
 0x170   : > { %5595 = vmatmul.mubr.msk.bf16.gmra.mrb[144].mxu0 %vm888_vm1, %v6021_v49  ;;  %5671 = vmatmul.mubr.msk.bf16.gmra.mrb[144].mxu1 %vm888_vm1, %v6022_v50 }
 0x171   : > { %5598 = vmatprep.mubr.msk.bf16.mxu0 %vm6130_vm0, %v6129_v1  ;;  %5674 = vmatprep.mubr.msk.bf16.mxu1 %vm6130_vm0, %v6129_v1 }
 0x173   : > { %v1493_v59 = vpop.f32.mrb[40].mxu1  ;;  %v1078_v60 = vpop.f32.mrb[40].mxu0 }
 0x174   : > { %v6776_v61 = vadd.f32 %v1493_v59, %v6710_v11  ;;  %v5452_v62 = vpop.f32.mrb[41].mxu1  ;;  %v5360_v3 = vpop.f32.mrb[41].mxu0 }
 0x175   : > { %v1496_v4 = vpop.f32.mrb[42].mxu1  ;;  %v6780_v5 = vpop.f32.mrb[42].mxu0 }
 0x176   : > { %v5453_v6 = vpop.f32.mrb[43].mxu1  ;;  %v5361_v8 = vpop.f32.mrb[43].mxu0 }
 0x178   : > { %5599 = vmatmul.mubr.msk.bf16.gmra.mrb[148].mxu0 %vm888_vm1, %v6023_v0  ;;  %5675 = vmatmul.mubr.msk.bf16.gmra.mrb[148].mxu1 %vm888_vm1, %v6024_v2 }
 0x179   : > { %5602 = vmatprep.mubr.msk.bf16.mxu0 %vm6130_vm0, %v6129_v1  ;;  %5678 = vmatprep.mubr.msk.bf16.mxu1 %vm6130_vm0, %v6129_v1 }
 0x17b   : > { %v1501_v9 = vpop.f32.mrb[44].mxu1  ;;  %v6788_v10 = vpop.f32.mrb[44].mxu0 }
 0x17c   : > { %v6791_v11 = vadd.f32 %v1501_v9, %v6724_v23  ;;  %v5456_v13 = vpop.f32.mrb[45].mxu1  ;;  %v5364_v16 = vpop.f32.mrb[45].mxu0  ;;  %v6034_v9 = vld [vmem:[%s6365_s14 + $0x98] sm:$0xff]  }
 0x17d   : > { %v1504_v17 = vpop.f32.mrb[46].mxu1  ;;  %v6795_v18 = vpop.f32.mrb[46].mxu0 }
 0x17e   : > { %v6798_v20 = vadd.f32 %v1504_v17, %v6728_v29  ;;  %v5457_v21 = vpop.f32.mrb[47].mxu1  ;;  %v5365_v22 = vpop.f32.mrb[47].mxu0 }
 0x180   : > { %5603 = vmatmul.mubr.msk.bf16.gmra.mrb[152].mxu0 %vm888_vm1, %v6025_v14  ;;  %5679 = vmatmul.mubr.msk.bf16.gmra.mrb[152].mxu1 %vm888_vm1, %v6026_v15  ;;  %v6042_v14 = vld [vmem:[%s6365_s14 + $0xe0] sm:$0xff]  }
 0x181   : > { %5606 = vmatprep.mubr.msk.bf16.mxu0 %vm6130_vm0, %v6129_v1  ;;  %5682 = vmatprep.mubr.msk.bf16.mxu1 %vm6130_vm0, %v6129_v1 }
 0x183   : > { %v1509_v23 = vpop.f32.mrb[48].mxu1  ;;  %v6806_v24 = vpop.f32.mrb[48].mxu0 }
 0x184   : > { %v6809_v25 = vadd.f32 %v1509_v23, %v6739_v34  ;;  %v5460_v26 = vpop.f32.mrb[49].mxu1  ;;  %v5368_v29 = vpop.f32.mrb[49].mxu0 }
 0x185   : > { %v1512_v31 = vpop.f32.mrb[50].mxu1  ;;  %v6813_v32 = vpop.f32.mrb[50].mxu0  ;;  %v6043_v29 = vld [vmem:[%s6365_s14 + $0xe8] sm:$0xff]  }
 0x186   : > { %v6816_v33 = vadd.f32 %v1512_v31, %v6746_v41  ;;  %v5461_v36 = vpop.f32.mrb[51].mxu1  ;;  %v5369_v37 = vpop.f32.mrb[51].mxu0  ;;  %v6030_v41 = vld [vmem:[%s6365_s14 + $0xcc] sm:$0xff]  }
 0x188   : > { %5607 = vmatmul.mubr.msk.bf16.gmra.mrb[156].mxu0 %vm888_vm1, %v6027_v27  ;;  %5683 = vmatmul.mubr.msk.bf16.gmra.mrb[156].mxu1 %vm888_vm1, %v6028_v28 }
 0x189   : > { %5610 = vmatprep.mubr.msk.bf16.mxu0 %vm6130_vm0, %v6129_v1  ;;  %5686 = vmatprep.mubr.msk.bf16.mxu1 %vm6130_vm0, %v6129_v1 }
 0x18b   : > { %v1517_v34 = vpop.f32.mrb[52].mxu1  ;;  %v6824_v38 = vpop.f32.mrb[52].mxu0 }
 0x18c   : > { %v6827_v39 = vadd.f32 %v1517_v34, %v6757_v46  ;;  %v5464_v40 = vpop.f32.mrb[53].mxu1  ;;  %v5372_v44 = vpop.f32.mrb[53].mxu0 }
 0x18d   : > { %v1520_v45 = vpop.f32.mrb[54].mxu1  ;;  %v1105_v48 = vpop.f32.mrb[54].mxu0 }
 0x18e   : > { %v6832_v49 = vadd.f32 %v1520_v45, %v6764_v54  ;;  %v5465_v50 = vpop.f32.mrb[55].mxu1  ;;  %v5373_v52 = vpop.f32.mrb[55].mxu0  ;;  %v6033_v54 = vld [vmem:[%s6365_s14 + $0x90] sm:$0xff]  }
 0x18f   : > { %v6044_v48 = vld [vmem:[%s6365_s14 + $0xf0] sm:$0xff]  }
 0x190   : > { %5611 = vmatmul.mubr.msk.bf16.gmra.mrb[160].mxu0 %vm888_vm1, %v6030_v41  ;;  %5687 = vmatmul.mubr.msk.bf16.gmra.mrb[160].mxu1 %vm888_vm1, %v6031_v43 }
 0x191   : > { %5614 = vmatprep.mubr.msk.bf16.mxu0 %vm6130_vm0, %v6129_v1  ;;  %5690 = vmatprep.mubr.msk.bf16.mxu1 %vm6130_vm0, %v6129_v1 }
 0x193   : > { %v1525_v46 = vpop.f32.mrb[56].mxu1  ;;  %v6840_v53 = vpop.f32.mrb[56].mxu0 }
 0x194   : > { %v5468_v56 = vpop.f32.mrb[57].mxu1  ;;  %v5376_v59 = vpop.f32.mrb[57].mxu0 }
 0x195   : > { %v1528_v60 = vpop.f32.mrb[58].mxu1  ;;  %v6844_v62 = vpop.f32.mrb[58].mxu0 }
 0x196   : > { %v6847_v0 = vadd.f32 %v1528_v60, %v6780_v5  ;;  %v5469_v2 = vpop.f32.mrb[59].mxu1  ;;  %v5377_v3 = vpop.f32.mrb[59].mxu0  ;;  %v6037_v60 = vld [vmem:[%s6365_s14 + $0xb4] sm:$0xff]  }
 0x197   : > { %v6045_v3 = vld [vmem:[%s6365_s14 + $0xf8] ss:$0 sps:$4 sm:$0xff]  }
 0x198   : > { %5615 = vmatmul.mubr.msk.bf16.gmra.mrb[164].mxu0 %vm888_vm1, %v6032_v57  ;;  %5691 = vmatmul.mubr.msk.bf16.gmra.mrb[164].mxu1 %vm888_vm1, %v6033_v54 }
 0x199   : > { %5694 = vmatprep.mubr.msk.bf16.mxu1 %vm6130_vm0, %v6129_v1  ;;  %5618 = vmatprep.mubr.msk.bf16.mxu0 %vm6130_vm0, %v6129_v1 }
 0x19b   : > { %v1533_v4 = vpop.f32.mrb[60].mxu1  ;;  %v6855_v6 = vpop.f32.mrb[60].mxu0 }
 0x19c   : > { %v6858_v8 = vadd.f32 %v1533_v4, %v6788_v10  ;;  %v5472_v5 = vpop.f32.mrb[61].mxu1  ;;  %v5380_v13 = vpop.f32.mrb[61].mxu0 }
 0x19d   : > { %v1536_v15 = vpop.f32.mrb[62].mxu1  ;;  %v1121_v16 = vpop.f32.mrb[62].mxu0 }
 0x19e   : > { %v6863_v17 = vadd.f32 %v1536_v15, %v6795_v18  ;;  %v5473_v21 = vpop.f32.mrb[63].mxu1  ;;  %v5381_v22 = vpop.f32.mrb[63].mxu0  ;;  %v6035_v18 = vld [vmem:[%s6365_s14 + $0xa4] sm:$0xff]  }
 0x1a0   : > { %5695 = vmatmul.mubr.msk.bf16.gmra.mrb[168].mxu1 %vm888_vm1, %v6034_v9  ;;  %5619 = vmatmul.mubr.msk.bf16.gmra.mrb[168].mxu0 %vm888_vm1, %v6042_v14 }
 0x1a1   : > { %5698 = vmatprep.mubr.msk.bf16.mxu1 %vm6130_vm0, %v6129_v1  ;;  %5622 = vmatprep.mubr.msk.bf16.mxu0 %vm6130_vm0, %v6129_v1 }
 0x1a3   : > { %v1541_v10 = vpop.f32.mrb[64].mxu1  ;;  %v1126_v23 = vpop.f32.mrb[64].mxu0 }
 0x1a4   : > { %v6872_v26 = vadd.f32 %v1541_v10, %v6806_v24  ;;  %v5476_v27 = vpop.f32.mrb[65].mxu1  ;;  %v5384_v28 = vpop.f32.mrb[65].mxu0  ;;  %v6038_v10 = vld [vmem:[%s6365_s14 + $0xbc] ss:$8 sps:$4 sm:$0xff]  }
 0x1a5   : > { %v1544_v31 = vpop.f32.mrb[66].mxu1  ;;  %v1129_v36 = vpop.f32.mrb[66].mxu0 }
 0x1a6   : > { %v6877_v37 = vadd.f32 %v1544_v31, %v6813_v32  ;;  %v5477_v34 = vpop.f32.mrb[67].mxu1  ;;  %v5385_v40 = vpop.f32.mrb[67].mxu0  ;;  %v6036_v32 = vld [vmem:[%s6365_s14 + $0xac] sm:$0xff]  }
 0x1a8   : > { %5699 = vmatmul.mubr.msk.bf16.gmra.mrb[172].mxu1 %vm888_vm1, %v6035_v18  ;;  %5623 = vmatmul.mubr.msk.bf16.gmra.mrb[172].mxu0 %vm888_vm1, %v6043_v29 }
 0x1a9   : > { %5702 = vmatprep.mubr.msk.bf16.mxu1 %vm6130_vm0, %v6129_v1  ;;  %5626 = vmatprep.mubr.msk.bf16.mxu0 %vm6130_vm0, %v6129_v1 }
 0x1ab   : > { %v1549_v24 = vpop.f32.mrb[68].mxu1  ;;  %v1134_v41 = vpop.f32.mrb[68].mxu0 }
 0x1ac   : > { %v6886_v43 = vadd.f32 %v1549_v24, %v6824_v38  ;;  %v5480_v44 = vpop.f32.mrb[69].mxu1  ;;  %v5388_v45 = vpop.f32.mrb[69].mxu0 }
 0x1ad   : > { %v1552_v50 = vpop.f32.mrb[70].mxu1  ;;  %v1137_v52 = vpop.f32.mrb[70].mxu0  ;;  %v6039_v44 = vld [vmem:[%s6365_s14 + $0xc8] sm:$0xff]  }
 0x1ae   : > { %v5481_v46 = vpop.f32.mrb[71].mxu1  ;;  %v5389_v56 = vpop.f32.mrb[71].mxu0 }
 0x1b0   : > { %5703 = vmatmul.mubr.msk.bf16.gmra.mrb[176].mxu1 %vm888_vm1, %v6036_v32  ;;  %5627 = vmatmul.mubr.msk.bf16.gmra.mrb[176].mxu0 %vm888_vm1, %v6044_v48 }
 0x1b1   : > { %5706 = vmatprep.mubr.msk.bf16.mxu1 %vm6130_vm0, %v6129_v1  ;;  %5630 = vmatprep.mubr.msk.bf16.mxu0 %vm6130_vm0, %v6129_v1 }
 0x1b3   : > { %v1557_v38 = vpop.f32.mrb[72].mxu1  ;;  %v1142_v57 = vpop.f32.mrb[72].mxu0 }
 0x1b4   : > { %v6897_v54 = vadd.f32 %v1557_v38, %v6840_v53  ;;  %v5484_v59 = vpop.f32.mrb[73].mxu1  ;;  %v5392_v2 = vpop.f32.mrb[73].mxu0 }
 0x1b5   : > { %v1560_v4 = vpop.f32.mrb[74].mxu1  ;;  %v1145_v5 = vpop.f32.mrb[74].mxu0 }
 0x1b6   : > { %v6902_v9 = vadd.f32 %v1560_v4, %v6844_v62  ;;  %v5485_v13 = vpop.f32.mrb[75].mxu1  ;;  %v5393_v14 = vpop.f32.mrb[75].mxu0 }
 0x1b8   : > { %5707 = vmatmul.mubr.msk.bf16.gmra.mrb[180].mxu1 %vm888_vm1, %v6037_v60  ;;  %5631 = vmatmul.mubr.msk.bf16.gmra.mrb[180].mxu0 %vm888_vm1, %v6045_v3  ;;  %v6040_v60 = vld [vmem:[%s6365_s14 + $0xd0] sm:$0xff]  }
 0x1b9   : > { %5710 = vmatprep.mubr.msk.bf16.mxu1 %vm6130_vm0, %v6129_v1 }
 0x1bb   : > { %v1565_v53 = vpop.f32.mrb[76].mxu1  ;;  %v1150_v15 = vpop.f32.mrb[76].mxu0 }
 0x1bc   : > { %v6909_v21 = vadd.f32 %v1565_v53, %v6855_v6  ;;  %v5488_v22 = vpop.f32.mrb[77].mxu1  ;;  %v5396_v27 = vpop.f32.mrb[77].mxu0 }
 0x1bd   : > { %v1568_v62 = vpop.f32.mrb[78].mxu1  ;;  %v1153_v18 = vpop.f32.mrb[78].mxu0 }
 0x1be   : > { %v6912_v28 = vadd.f32 %v1568_v62, %v1121_v16  ;;  %v5489_v29 = vpop.f32.mrb[79].mxu1  ;;  %v5397_v31 = vpop.f32.mrb[79].mxu0  ;;  %v6041_v62 = vld [vmem:[%s6365_s14 + $0xd8] sm:$0xff]  }
 0x1c0   : > { %5711 = vmatmul.mubr.msk.bf16.gmra.mrb[184].mxu1 %vm888_vm1, %v6038_v10 }
 0x1c1   : > { %5714 = vmatprep.mubr.msk.bf16.mxu1 %vm6130_vm0, %v6129_v1 }
 0x1c3   : > { %v1573_v34 = vpop.f32.mrb[80].mxu1  ;;  %v1158_v40 = vpop.f32.mrb[80].mxu0 }
 0x1c4   : > { %v6917_v24 = vadd.f32 %v1573_v34, %v1126_v23  ;;  %v5492_v6 = vpop.f32.mrb[81].mxu1  ;;  %v5400_v41 = vpop.f32.mrb[81].mxu0 }
 0x1c5   : > { %v1576_v32 = vpop.f32.mrb[82].mxu1  ;;  %v1161_v45 = vpop.f32.mrb[82].mxu0 }
 0x1c6   : > { %v6920_v48 = vadd.f32 %v1576_v32, %v1129_v36  ;;  %v5493_v16 = vpop.f32.mrb[83].mxu1  ;;  %v5401_v50 = vpop.f32.mrb[83].mxu0 }
 0x1c8   : > { %5715 = vmatmul.mubr.msk.bf16.gmra.mrb[188].mxu1 %vm888_vm1, %v6039_v44 }
 0x1c9   : > { %5718 = vmatprep.mubr.msk.bf16.mxu1 %vm6130_vm0, %v6129_v1 }
 0x1cb   : > { %v1581_v46 = vpop.f32.mrb[84].mxu1  ;;  %v1951_v56 = vpop.f32.mrb[84].mxu0 }
 0x1cc   : > { %v6926_v23 = vadd.f32 %v1951_v56, %v6680_v51  ;;  %v5496_v38 = vpop.f32.mrb[85].mxu1  ;;  %v5536_v59 = vpop.f32.mrb[85].mxu0 }
 0x1cd   : > { %v1584_v2 = vpop.f32.mrb[86].mxu1  ;;  %v1954_v3 = vpop.f32.mrb[86].mxu0 }
 0x1ce   : > { %v6929_v36 = vadd.f32 %v1584_v2, %v1137_v52  ;;  %v6932_v4 = vadd.f32 %v1954_v3, %v6686_v58  ;;  %v5497_v13 = vpop.f32.mrb[87].mxu1  ;;  %v5537_v14 = vpop.f32.mrb[87].mxu0 }
 0x1d0   : > { %5719 = vmatmul.mubr.msk.bf16.gmra.mrb[192].mxu1 %vm888_vm1, %v6040_v60 }
 0x1d1   : > { %5722 = vmatprep.mubr.msk.bf16.mxu1 %vm6130_vm0, %v6129_v1 }
 0x1d3   : > { %v1589_v51 = vpop.f32.mrb[88].mxu1  ;;  %v1959_v53 = vpop.f32.mrb[88].mxu0 }
 0x1d4   : > { %v6937_v22 = vadd.f32 %v1589_v51, %v1142_v57  ;;  %v6940_v10 = vadd.f32 %v1959_v53, %v6696_v63  ;;  %v5500_v27 = vpop.f32.mrb[89].mxu1  ;;  %v5540_v52 = vpop.f32.mrb[89].mxu0 }
 0x1d5   : > { %v1592_v29 = vpop.f32.mrb[90].mxu1  ;;  %v1962_v58 = vpop.f32.mrb[90].mxu0 }
 0x1d6   : > { %v6943_v31 = vadd.f32 %v1592_v29, %v1145_v5  ;;  %v6946_v34 = vadd.f32 %v1962_v58, %v6702_v7  ;;  %v5501_v6 = vpop.f32.mrb[91].mxu1  ;;  %v5541_v41 = vpop.f32.mrb[91].mxu0  ;;  %v6959_v7 = vld [vmem:[%s7419_s3] sm:$0xff]  }
 0x1d7   : > { %5748 = vmatprep.subr.bf16.mxu0 %v6959_v7 }
 0x1d8   : > { %5723 = vmatmul.mubr.msk.bf16.gmra.mrb[196].mxu1 %vm888_vm1, %v6041_v62 }
 0x1d9   : > { %5726 = vmatprep.mubr.msk.bf16.mxu1 %vm6130_vm0, %v6129_v1 }
 0x1db   : > { %v1597_v57 = vpop.f32.mrb[92].mxu1  ;;  %v1967_v63 = vpop.f32.mrb[92].mxu0 }
 0x1dc   : > { %v6951_v44 = vadd.f32 %v1597_v57, %v1150_v15  ;;  %v6954_v32 = vadd.f32 %v1967_v63, %v6712_v12  ;;  %v5504_v45 = vpop.f32.mrb[93].mxu1  ;;  %v5544_v5 = vpop.f32.mrb[93].mxu0 }
 0x1dd   : > { %v1600_v16 = vpop.f32.mrb[94].mxu1  ;;  %v1970_v50 = vpop.f32.mrb[94].mxu0 }
 0x1de   : > { %v6961_v46 = vadd.f32 %v1600_v16, %v1153_v18  ;;  %v6964_v56 = vadd.f32 %v1970_v50, %v6716_v19  ;;  %v5505_v38 = vpop.f32.mrb[95].mxu1  ;;  %v5545_v15 = vpop.f32.mrb[95].mxu0 }
 0x1e3   : > { %v1605_v12 = vpop.f32.mrb[96].mxu1  ;;  %v1975_v59 = vpop.f32.mrb[96].mxu0 }
 0x1e4   : > { %v6967_v60 = vadd.f32 %v1605_v12, %v1158_v40  ;;  %v5508_v2 = vpop.f32.mrb[97].mxu1  ;;  %v5548_v3 = vpop.f32.mrb[97].mxu0 }
 0x1e5   : > { %v1608_v13 = vpop.f32.mrb[98].mxu1  ;;  %v1978_v14 = vpop.f32.mrb[98].mxu0 }
 0x1e6   : > { %v6970_v51 = vadd.f32 %v1978_v14, %v6731_v30  ;;  %v5509_v18 = vpop.f32.mrb[99].mxu1  ;;  %v5549_v53 = vpop.f32.mrb[99].mxu0 }
 0x1eb   : > { %v1613_v27 = vpop.f32.mrb[100].mxu1  ;;  %v1983_v19 = vpop.f32.mrb[100].mxu0 }
 0x1ec   : > { %v6973_v52 = vadd.f32 %v1983_v19, %v6742_v35  ;;  %v5512_v62 = vpop.f32.mrb[101].mxu1  ;;  %v5552_v29 = vpop.f32.mrb[101].mxu0 }
 0x1ed   : > { %v1615_v58 = vpop.f32.mrb[102].mxu1  ;;  %v1986_v6 = vpop.f32.mrb[102].mxu0 }
 0x1ee   : > { %v6976_v40 = vadd.f32 %v1986_v6, %v6749_v42  ;;  %v5513_v41 = vpop.f32.mrb[103].mxu1  ;;  %v5553_v57 = vpop.f32.mrb[103].mxu0 }
 0x1f3   : > { %v1619_v63 = vpop.f32.mrb[104].mxu1  ;;  %v1991_v45 = vpop.f32.mrb[104].mxu0 }
 0x1f4   : > { %v6979_v30 = vadd.f32 %v1991_v45, %v6760_v47  ;;  %v5516_v5 = vpop.f32.mrb[105].mxu1  ;;  %v5556_v16 = vpop.f32.mrb[105].mxu0 }
 0x1f5   : > { %v1621_v50 = vpop.f32.mrb[106].mxu1  ;;  %v1994_v38 = vpop.f32.mrb[106].mxu0 }
 0x1f6   : > { %v6982_v35 = vadd.f32 %v1994_v38, %v6767_v55  ;;  %v5517_v15 = vpop.f32.mrb[107].mxu1  ;;  %v5557_v12 = vpop.f32.mrb[107].mxu0 }
 0x1fb   : > { %v1625_v59 = vpop.f32.mrb[108].mxu1  ;;  %v1999_v2 = vpop.f32.mrb[108].mxu0 }
 0x1fc   : > { %v6985_v42 = vadd.f32 %v1999_v2, %v6776_v61  ;;  %v5520_v3 = vpop.f32.mrb[109].mxu1  ;;  %v5560_v13 = vpop.f32.mrb[109].mxu0 }
 0x1fd   : > { %v1627_v14 = vpop.f32.mrb[110].mxu1  ;;  %v2002_v18 = vpop.f32.mrb[110].mxu0  ;;  %v7004_v3 = vld [vmem:[%s7418_s2] ss:$0 sm:$0xff] }
 0x1fe   : > { %v5521_v47 = vpop.f32.mrb[111].mxu1  ;;  %v5561_v53 = vpop.f32.mrb[111].mxu0 }
 0x203   : > { %v1631_v27 = vpop.f32.mrb[112].mxu1  ;;  %v2007_v19 = vpop.f32.mrb[112].mxu0 }
 0x204   : > { %v6988_v62 = vadd.f32 %v2007_v19, %v6791_v11  ;;  %v5524_v55 = vpop.f32.mrb[113].mxu1  ;;  %v5564_v29 = vpop.f32.mrb[113].mxu0 }
 0x205   : > { %v1633_v58 = vpop.f32.mrb[114].mxu1  ;;  %v2010_v6 = vpop.f32.mrb[114].mxu0 }
 0x206   : > { %v6991_v41 = vadd.f32 %v2010_v6, %v6798_v20  ;;  %v5525_v61 = vpop.f32.mrb[115].mxu1  ;;  %v5565_v57 = vpop.f32.mrb[115].mxu0 }
 0x20b   : > { %v2015_v63 = vpop.f32.mrb[116].mxu0  ;;  %v2499_v45 = vpop.f32.mrb[116].mxu1 }
 0x20c   : > { %v6994_v5 = vadd.f32 %v2015_v63, %v6809_v25  ;;  %v2690_v16 = vadd.f32 %v2499_v45, %v6926_v23  ;;  %v5568_v50 = vpop.f32.mrb[117].mxu0  ;;  %v5644_v38 = vpop.f32.mrb[117].mxu1 }
 0x20d   : > { %v2018_v11 = vpop.f32.mrb[118].mxu0  ;;  %v2502_v15 = vpop.f32.mrb[118].mxu1 }
 0x20e   : > { %v6998_v12 = vadd.f32 %v2018_v11, %v6816_v33  ;;  %v2691_v59 = vadd.f32 %v2502_v15, %v6932_v4  ;;  %v5645_v20 = vpop.f32.mrb[119].mxu1  ;;  %v5569_v2 = vpop.f32.mrb[119].mxu0  ;;  %v2739_v23 = vadd.f32 %v7004_v3, %v2690_v16 }
 0x210   : > { %v2740_v27 = vadd.f32 %v7004_v3, %v2691_v59  ;;  %v2781_v61 = vmax.f32 %v2739_v23, 0.0 }
 0x213   : > { %v2023_v25 = vpop.f32.mrb[120].mxu0  ;;  %v2507_v13 = vpop.f32.mrb[120].mxu1 }
 0x214   : > { %v7008_v14 = vadd.f32 %v2023_v25, %v6827_v39  ;;  %v2692_v18 = vadd.f32 %v2507_v13, %v6940_v10  ;;  %v5572_v33 = vpop.f32.mrb[121].mxu0  ;;  %v5648_v47 = vpop.f32.mrb[121].mxu1  ;;  %v2782_v10 = vmax.f32 %v2740_v27, 0.0 }
 0x215   : > { %v2026_v53 = vpop.f32.mrb[122].mxu0  ;;  %v2510_v4 = vpop.f32.mrb[122].mxu1 }
 0x216   : > { %v2741_v19 = vadd.f32 %v7004_v3, %v2692_v18  ;;  %v7014_v55 = vadd.f32 %v2026_v53, %v6832_v49  ;;  %v2693_v29 = vadd.f32 %v2510_v4, %v6946_v34  ;;  %v5649_v58 = vpop.f32.mrb[123].mxu1  ;;  %v5573_v6 = vpop.f32.mrb[123].mxu0 }
 0x218   : > { %v2783_v39 = vmax.f32 %v2741_v19, 0.0  ;;  %v2742_v57 = vadd.f32 %v7004_v3, %v2693_v29 }
 0x21a   : > { %v7018_v63 = vpack.c.bf16 %v2783_v39, %v2781_v61  ;;  %v2784_v45 = vmax.f32 %v2742_v57, 0.0 }
 0x21b   : > { %v2031_v16 = vpop.f32.mrb[124].mxu0  ;;  %v2515_v50 = vpop.f32.mrb[124].mxu1 }
 0x21c   : > { %v5096_v38 = vpack.c.bf16 %v2784_v45, %v2782_v10  ;;  %v2694_v11 = vadd.f32 %v2515_v50, %v6954_v32  ;;  %v5576_v49 = vpop.f32.mrb[125].mxu0  ;;  %v5652_v15 = vpop.f32.mrb[125].mxu1 }
 0x21d   : > { %v2034_v59 = vpop.f32.mrb[126].mxu0  ;;  %v2518_v34 = vpop.f32.mrb[126].mxu1 }
 0x21e   : > { %v2743_v20 = vadd.f32 %v7004_v3, %v2694_v11  ;;  %v7023_v2 = vadd.f32 %v2034_v59, %v6847_v0  ;;  %v2695_v25 = vadd.f32 %v2518_v34, %v6964_v56  ;;  %v5653_v13 = vpop.f32.mrb[127].mxu1  ;;  %5744 = vmatprep.mubr.msk.bf16.mxu0 %vm2914_vm2, %v5096_v38  ;;  %v5577_v23 = vpop.f32.mrb[127].mxu0 }
 0x220   : > { %v2785_v18 = vmax.f32 %v2743_v20, 0.0  ;;  %v2744_v33 = vadd.f32 %v7004_v3, %v2695_v25 }
 0x222   : > { %v7028_v47 = vpack.c.bf16 %v2785_v18, %v2783_v39  ;;  %v2786_v32 = vmax.f32 %v2744_v33, 0.0 }
 0x223   : > { %v2039_v53 = vpop.f32.mrb[128].mxu0  ;;  %v2523_v4 = vpop.f32.mrb[128].mxu1 }
 0x224   : > { %v7030_v27 = vpack.c.bf16 %v2786_v32, %v2784_v45  ;;  %v7033_v19 = vadd.f32 %v2039_v53, %v6858_v8  ;;  %v5580_v0 = vpop.f32.mrb[129].mxu0  ;;  %v5656_v29 = vpop.f32.mrb[129].mxu1 }
 0x225   : > { %v2042_v56 = vpop.f32.mrb[130].mxu0  ;;  %v2526_v58 = vpop.f32.mrb[130].mxu1 }
 0x226   : > { %v7036_v6 = vadd.f32 %v2042_v56, %v6863_v17  ;;  %v2697_v61 = vadd.f32 %v2526_v58, %v6970_v51  ;;  %v5657_v57 = vpop.f32.mrb[131].mxu1  ;;  %v5581_v39 = vpop.f32.mrb[131].mxu0 }
 0x228   : > { %v2746_v15 = vadd.f32 %v7004_v3, %v2697_v61 }
 0x22a   : > { %v2788_v25 = vmax.f32 %v2746_v15, 0.0 }
 0x22b   : > { %v2047_v10 = vpop.f32.mrb[132].mxu0  ;;  %v2531_v16 = vpop.f32.mrb[132].mxu1 }
 0x22c   : > { %v7040_v50 = vadd.f32 %v2047_v10, %v6872_v26  ;;  %v2698_v45 = vadd.f32 %v2531_v16, %v6973_v52  ;;  %v5584_v8 = vpop.f32.mrb[133].mxu0  ;;  %v5660_v38 = vpop.f32.mrb[133].mxu1 }
 0x22d   : > { %v2050_v11 = vpop.f32.mrb[134].mxu0  ;;  %v2534_v49 = vpop.f32.mrb[134].mxu1 }
 0x22e   : > { %v7045_v17 = vadd.f32 %v2050_v11, %v6877_v37  ;;  %v2699_v51 = vadd.f32 %v2534_v49, %v6976_v40  ;;  %v5661_v59 = vpop.f32.mrb[135].mxu1  ;;  %v5585_v34 = vpop.f32.mrb[135].mxu0  ;;  %v2747_v52 = vadd.f32 %v7004_v3, %v2698_v45 }
 0x230   : > { %v2748_v20 = vadd.f32 %v7004_v3, %v2699_v51  ;;  %v2789_v61 = vmax.f32 %v2747_v52, 0.0 }
 0x232   : > { %v2790_v26 = vmax.f32 %v2748_v20, 0.0 }
 0x233   : > { %v2055_v13 = vpop.f32.mrb[136].mxu0  ;;  %v2539_v23 = vpop.f32.mrb[136].mxu1 }
 0x234   : > { %v7050_v18 = vpack.c.bf16 %v2790_v26, %v2788_v25  ;;  %v7053_v33 = vadd.f32 %v2055_v13, %v6886_v43  ;;  %v2700_v37 = vadd.f32 %v2539_v23, %v6979_v30  ;;  %v5664_v32 = vpop.f32.mrb[137].mxu1  ;;  %v5588_v53 = vpop.f32.mrb[137].mxu0 }
 0x235   : > { %v2542_v40 = vpop.f32.mrb[138].mxu1  ;;  %v2058_v4 = vpop.f32.mrb[138].mxu0 }
 0x236   : > { %v2749_v0 = vadd.f32 %v7004_v3, %v2700_v37  ;;  %v2701_v29 = vadd.f32 %v2542_v40, %v6982_v35  ;;  %v5665_v56 = vpop.f32.mrb[139].mxu1  ;;  %v5589_v58 = vpop.f32.mrb[139].mxu0 }
 0x238   : > { %v2791_v57 = vmax.f32 %v2749_v0, 0.0  ;;  %v2750_v39 = vadd.f32 %v7004_v3, %v2701_v29 }
 0x23a   : > { %v7059_v10 = vpack.c.bf16 %v2791_v57, %v2789_v61  ;;  %v2792_v43 = vmax.f32 %v2750_v39, 0.0 }
 0x23b   : > { %v2063_v16 = vpop.f32.mrb[140].mxu0  ;;  %v2547_v45 = vpop.f32.mrb[140].mxu1 }
 0x23c   : > { %v7061_v30 = vpack.c.bf16 %v2792_v43, %v2790_v26  ;;  %v7064_v8 = vadd.f32 %v2063_v16, %v6897_v54  ;;  %v2702_v38 = vadd.f32 %v2547_v45, %v6985_v42  ;;  %v5592_v11 = vpop.f32.mrb[141].mxu0  ;;  %v5668_v35 = vpop.f32.mrb[141].mxu1 }
 0x23d   : > { %v2066_v49 = vpop.f32.mrb[142].mxu0  ;;  %v2550_v15 = vpop.f32.mrb[142].mxu1 }
 0x23e   : > { %v2751_v51 = vadd.f32 %v7004_v3, %v2702_v38  ;;  %v7069_v59 = vadd.f32 %v2066_v49, %v6902_v9  ;;  %v5669_v34 = vpop.f32.mrb[143].mxu1  ;;  %v5593_v20 = vpop.f32.mrb[143].mxu0 }
 0x240   : > { %v2793_v25 = vmax.f32 %v2751_v51, 0.0 }
 0x242   : > { %v7071_v13 = vpack.c.bf16 %v2793_v25, %v2791_v57 }
 0x243   : > { %v2071_v26 = vpop.f32.mrb[144].mxu0  ;;  %v2555_v23 = vpop.f32.mrb[144].mxu1 }
 0x244   : > { %v7074_v54 = vadd.f32 %v2071_v26, %v6909_v21  ;;  %v2704_v42 = vadd.f32 %v2555_v23, %v6988_v62  ;;  %v5596_v52 = vpop.f32.mrb[145].mxu0  ;;  %v5672_v37 = vpop.f32.mrb[145].mxu1 }
 0x245   : > { %v2074_v32 = vpop.f32.mrb[146].mxu0  ;;  %v2558_v53 = vpop.f32.mrb[146].mxu1 }
 0x246   : > { %v7078_v40 = vadd.f32 %v2074_v32, %v6912_v28  ;;  %v2705_v9 = vadd.f32 %v2558_v53, %v6991_v41  ;;  %v5673_v4 = vpop.f32.mrb[147].mxu1  ;;  %v5597_v0 = vpop.f32.mrb[147].mxu0  ;;  %v2753_v58 = vadd.f32 %v7004_v3, %v2704_v42 }
 0x248   : > { %v2754_v28 = vadd.f32 %v7004_v3, %v2705_v9  ;;  %v2795_v35 = vmax.f32 %v2753_v58, 0.0 }
 0x24b   : > { %v2079_v29 = vpop.f32.mrb[148].mxu0  ;;  %v2563_v56 = vpop.f32.mrb[148].mxu1 }
 0x24c   : > { %v7083_v21 = vadd.f32 %v2079_v29, %v6917_v24  ;;  %v2706_v62 = vadd.f32 %v2563_v56, %v6994_v5  ;;  %v5600_v61 = vpop.f32.mrb[149].mxu0  ;;  %v5676_v57 = vpop.f32.mrb[149].mxu1  ;;  %v2796_v5 = vmax.f32 %v2754_v28, 0.0 }
 0x24d   : > { %v2082_v39 = vpop.f32.mrb[150].mxu0  ;;  %v2566_v43 = vpop.f32.mrb[150].mxu1 }
 0x24e   : > { %v2755_v16 = vadd.f32 %v7004_v3, %v2706_v62  ;;  %v7089_v41 = vadd.f32 %v2082_v39, %v6920_v48  ;;  %v2707_v45 = vadd.f32 %v2566_v43, %v6998_v12  ;;  %v5677_v38 = vpop.f32.mrb[151].mxu1  ;;  %v5601_v11 = vpop.f32.mrb[151].mxu0  ;;  %v6047_v12 = vld [vmem:[%s7419_s3 + $0x10] sm:$0xff]  }
 0x250   : > { %v2797_v24 = vmax.f32 %v2755_v16, 0.0  ;;  %v2756_v49 = vadd.f32 %v7004_v3, %v2707_v45  ;;  %v6048_v45 = vld [vmem:[%s7419_s3 + $0x18] sm:$0xff]  }
 0x252   : > { %v7093_v15 = vpack.c.bf16 %v2797_v24, %v2795_v35  ;;  %v2798_v51 = vmax.f32 %v2756_v49, 0.0 }
 0x253   : > { %v2087_v34 = vpop.f32.mrb[152].mxu0  ;;  %v2571_v20 = vpop.f32.mrb[152].mxu1 }
 0x254   : > { %v7095_v25 = vpack.c.bf16 %v2798_v51, %v2796_v5  ;;  %v2708_v26 = vadd.f32 %v2571_v20, %v7008_v14  ;;  %v5604_v48 = vpop.f32.mrb[153].mxu0  ;;  %v5680_v23 = vpop.f32.mrb[153].mxu1 }
 0x255   : > { %v2090_v42 = vpop.f32.mrb[154].mxu0  ;;  %v2574_v52 = vpop.f32.mrb[154].mxu1 }
 0x256   : > { %v2757_v37 = vadd.f32 %v7004_v3, %v2708_v26  ;;  %v7103_v32 = vadd.f32 %v2090_v42, %v6929_v36  ;;  %v2709_v53 = vadd.f32 %v2574_v52, %v7014_v55  ;;  %5745 = vmatmul.mubr.msk.bf16.vlgmr.msra.gmra.mrb[184].mxu0 %vm2914_vm2, %v7095_v25  ;;  %v5605_v9 = vpop.f32.mrb[155].mxu0  ;;  %v5681_v14 = vpop.f32.mrb[155].mxu1 }
 0x257   : > { %5749 = vmatpush3.bf16.msra.mxu0 %v6959_v7  ;;  %5750 = vmatprep.mubr.msk.bf16.mxu0 %vm2914_vm2, %v7018_v63 }
 0x258   : > { %v2799_v4 = vmax.f32 %v2757_v37, 0.0  ;;  %v2758_v0 = vadd.f32 %v7004_v3, %v2709_v53  ;;  %5754 = vmatprep.subr.bf16.mxu0 %v6047_v12 }
 0x25a   : > { %v7112_v29 = vpack.c.bf16 %v2799_v4, %v2797_v24  ;;  %v2800_v36 = vmax.f32 %v2758_v0, 0.0 }
 0x25b   : > { %v2095_v56 = vpop.f32.mrb[156].mxu0  ;;  %v2579_v58 = vpop.f32.mrb[156].mxu1 }
 0x25c   : > { %v7114_v55 = vpack.c.bf16 %v2800_v36, %v2798_v51  ;;  %v7117_v62 = vadd.f32 %v2095_v56, %v6937_v22  ;;  %v5608_v61 = vpop.f32.mrb[157].mxu0  ;;  %v5684_v57 = vpop.f32.mrb[157].mxu1 }
 0x25d   : > { %v2098_v7 = vpop.f32.mrb[158].mxu0  ;;  %v2582_v39 = vpop.f32.mrb[158].mxu1 }
 0x25e   : > { %v7120_v63 = vadd.f32 %v2098_v7, %v6943_v31  ;;  %v2711_v43 = vadd.f32 %v2582_v39, %v7023_v2  ;;  %v5609_v28 = vpop.f32.mrb[159].mxu0  ;;  %v5685_v16 = vpop.f32.mrb[159].mxu1 }
 0x260   : > { %v2760_v5 = vadd.f32 %v7004_v3, %v2711_v43 }
 0x262   : > { %5751 = vmatmul.mubr.msk.bf16.vlgmr.msra.gmra.mrb[184].mxu0 %vm2914_vm2, %v7093_v15 }
 0x263   : > { %v2103_v22 = vpop.f32.mrb[160].mxu0  ;;  %v2587_v38 = vpop.f32.mrb[160].mxu1  ;;  %5755 = vmatpush3.bf16.msra.mxu0 %v6047_v12  ;;  %5756 = vmatprep.mubr.msk.bf16.mxu0 %vm2914_vm2, %v7028_v47 }
 0x264   : > { %v7131_v31 = vadd.f32 %v2103_v22, %v6951_v44  ;;  %v2712_v2 = vadd.f32 %v2587_v38, %v7033_v19  ;;  %v5612_v11 = vpop.f32.mrb[161].mxu0  ;;  %v5688_v35 = vpop.f32.mrb[161].mxu1  ;;  %5760 = vmatprep.subr.bf16.mxu0 %v6048_v45  ;;  %v2802_v44 = vmax.f32 %v2760_v5, 0.0 }
 0x265   : > { %v2106_v24 = vpop.f32.mrb[162].mxu0  ;;  %v2590_v49 = vpop.f32.mrb[162].mxu1  ;;  %v6050_v35 = vld [vmem:[%s7419_s3 + $0x28] sm:$0xff]  }
 0x266   : > { %v7136_v51 = vadd.f32 %v2106_v24, %v6961_v46  ;;  %v2713_v34 = vadd.f32 %v2590_v49, %v7036_v6  ;;  %v5613_v20 = vpop.f32.mrb[163].mxu0  ;;  %v5689_v26 = vpop.f32.mrb[163].mxu1  ;;  %v2761_v12 = vadd.f32 %v7004_v3, %v2712_v2  ;;  %v6049_v6 = vld [vmem:[%s7419_s3 + $0x20] sm:$0xff]  }
 0x268   : > { %v2762_v47 = vadd.f32 %v7004_v3, %v2713_v34 }
 0x26a   : > { %v2804_v48 = vmax.f32 %v2762_v47, 0.0 }
 0x26b   : > { %v2111_v23 = vpop.f32.mrb[164].mxu0  ;;  %v2595_v19 = vpop.f32.mrb[164].mxu1 }
 0x26c   : > { %v7141_v42 = vpack.c.bf16 %v2804_v48, %v2802_v44  ;;  %v7144_v52 = vadd.f32 %v2111_v23, %v6967_v60  ;;  %v2714_v46 = vadd.f32 %v2595_v19, %v7040_v50  ;;  %v5692_v37 = vpop.f32.mrb[165].mxu1  ;;  %v5616_v53 = vpop.f32.mrb[165].mxu0  ;;  %v2803_v50 = vmax.f32 %v2761_v12, 0.0 }
 0x26d   : > { %v2598_v9 = vpop.f32.mrb[166].mxu1  ;;  %v2114_v14 = vpop.f32.mrb[166].mxu0 }
 0x26e   : > { %v2763_v4 = vadd.f32 %v7004_v3, %v2714_v46  ;;  %v2715_v0 = vadd.f32 %v2598_v9, %v7045_v17  ;;  %5757 = vmatmul.mubr.msk.bf16.vlgmr.msra.gmra.mrb[184].mxu0 %vm2914_vm2, %v7112_v29  ;;  %v5693_v36 = vpop.f32.mrb[167].mxu1  ;;  %v5617_v60 = vpop.f32.mrb[167].mxu0 }
 0x26f   : > { %5761 = vmatpush3.bf16.msra.mxu0 %v6048_v45  ;;  %5762 = vmatprep.mubr.msk.bf16.mxu0 %vm2914_vm2, %v7030_v27 }
 0x270   : > { %v2805_v56 = vmax.f32 %v2763_v4, 0.0  ;;  %v2764_v58 = vadd.f32 %v7004_v3, %v2715_v0  ;;  %5766 = vmatprep.subr.bf16.mxu0 %v6049_v6 }
 0x272   : > { %v7157_v61 = vpack.c.bf16 %v2805_v56, %v2803_v50  ;;  %v2806_v57 = vmax.f32 %v2764_v58, 0.0 }
 0x273   : > { %v2603_v7 = vpop.f32.mrb[168].mxu1  ;;  %v2119_v39 = vpop.f32.mrb[168].mxu0 }
 0x274   : > { %v7159_v17 = vpack.c.bf16 %v2806_v57, %v2804_v48  ;;  %v2716_v43 = vadd.f32 %v2603_v7, %v7053_v33  ;;  %v5696_v28 = vpop.f32.mrb[169].mxu1  ;;  %v5620_v16 = vpop.f32.mrb[169].mxu0  ;;  %v6063_v7 = vld [vmem:[%s7421_s5 + $0x24] ss:$8 sps:$4 sm:$0xff]  }
 0x275   : > { %v2606_v45 = vpop.f32.mrb[170].mxu1  ;;  %v2121_v22 = vpop.f32.mrb[170].mxu0  ;;  %v6067_v39 = vld [vmem:[%s6365_s14 + $0xe4] sm:$0xff]   ;;  %v6066_v28 = vld [vmem:[%s7421_s5 + $0x34] ss:$8 sps:$4 sm:$0xff]   ;;  %4041 = vmatprep.subr.bf16.mxu1 %v6063_v7 }
 0x276   : > { %v2765_v27 = vadd.f32 %v7004_v3, %v2716_v43  ;;  %v5697_v38 = vpop.f32.mrb[171].mxu1  ;;  %v5621_v2 = vpop.f32.mrb[171].mxu0  ;;  %5727 = vmatmul.mubr.msk.bf16.gmra.mrb[200].mxu1 %vm888_vm1, %v6067_v39 }
 0x277   : > { %5730 = vmatprep.mubr.msk.bf16.mxu1 %vm6130_vm0, %v6129_v1 }
 0x278   : > { %v2807_v11 = vmax.f32 %v2765_v27, 0.0 }
 0x27a   : > { %v7166_v24 = vpack.c.bf16 %v2807_v11, %v2805_v56  ;;  %5763 = vmatmul.mubr.msk.bf16.vlgmr.msra.gmra.mrb[184].mxu0 %vm2914_vm2, %v7114_v55  ;;  %v6064_v11 = vld [vmem:[%s7421_s5 + $0x30] ss:$8 sps:$4 sm:$0xff]  }
 0x27b   : > { %v2611_v49 = vpop.f32.mrb[172].mxu1  ;;  %5767 = vmatpush3.bf16.msra.mxu0 %v6049_v6  ;;  %5768 = vmatprep.mubr.msk.bf16.mxu0 %vm2914_vm2, %v7050_v18  ;;  %v2125_v33 = vpop.f32.mrb[172].mxu0  ;;  %v6051_v18 = vld [vmem:[%s7419_s3 + $0x30] sm:$0xff]  }
 0x27c   : > { %v2718_v5 = vadd.f32 %v2611_v49, %v7064_v8  ;;  %v5700_v34 = vpop.f32.mrb[173].mxu1  ;;  %5772 = vmatprep.subr.bf16.mxu0 %v6050_v35  ;;  %v5624_v20 = vpop.f32.mrb[173].mxu0 }
 0x27d   : > { %v2614_v26 = vpop.f32.mrb[174].mxu1  ;;  %v2127_v47 = vpop.f32.mrb[174].mxu0  ;;  %v6052_v20 = vld [vmem:[%s7419_s3 + $0x38] sm:$0xff]  }
 0x27e   : > { %v2719_v44 = vadd.f32 %v2614_v26, %v7069_v59  ;;  %v5701_v48 = vpop.f32.mrb[175].mxu1  ;;  %v5625_v23 = vpop.f32.mrb[175].mxu0  ;;  %v2767_v46 = vadd.f32 %v7004_v3, %v2718_v5  ;;  %v6068_v26 = vld [vmem:[%s6365_s14 + $0xec] sm:$0xff]  }
 0x27f   : > { %5731 = vmatmul.mubr.msk.bf16.gmra.mrb[204].mxu1 %vm888_vm1, %v6068_v26 }
 0x280   : > { %v2768_v53 = vadd.f32 %v7004_v3, %v2719_v44  ;;  %v2809_v36 = vmax.f32 %v2767_v46, 0.0  ;;  %5734 = vmatprep.mubr.msk.bf16.mxu1 %vm6130_vm0, %v6129_v1 }
 0x282   : > { %v2810_v56 = vmax.f32 %v2768_v53, 0.0 }
 0x283   : > { %v2619_v19 = vpop.f32.mrb[176].mxu1  ;;  %v2131_v12 = vpop.f32.mrb[176].mxu0 }
 0x284   : > { %v2720_v37 = vadd.f32 %v2619_v19, %v7074_v54  ;;  %v5704_v6 = vpop.f32.mrb[177].mxu1  ;;  %v5628_v8 = vpop.f32.mrb[177].mxu0 }
 0x285   : > { %v2622_v9 = vpop.f32.mrb[178].mxu1  ;;  %v2133_v14 = vpop.f32.mrb[178].mxu0 }
 0x286   : > { %v2769_v59 = vadd.f32 %v7004_v3, %v2720_v37  ;;  %v2721_v4 = vadd.f32 %v2622_v9, %v7078_v40  ;;  %5769 = vmatmul.mubr.msk.bf16.vlgmr.msra.gmra.mrb[184].mxu0 %vm2914_vm2, %v7141_v42  ;;  %v5705_v0 = vpop.f32.mrb[179].mxu1  ;;  %v5629_v54 = vpop.f32.mrb[179].mxu0  ;;  %v6061_v40 = vld [vmem:[%s7421_s5 + $0x20] ss:$8 sps:$4 sm:$0xff]   ;;  %v6069_v37 = vld [vmem:[%s6365_s14 + $0xf4] sm:$0xff]  }
 0x287   : > { %5773 = vmatpush3.bf16.msra.mxu0 %v6050_v35  ;;  %5774 = vmatprep.mubr.msk.bf16.mxu0 %vm2914_vm2, %v7059_v10 }
 0x288   : > { %v2811_v60 = vmax.f32 %v2769_v59, 0.0  ;;  %v2770_v50 = vadd.f32 %v7004_v3, %v2721_v4  ;;  %5778 = vmatprep.subr.bf16.mxu0 %v6051_v18  ;;  %4042 = vmatpush1.bf16.msra.mxu1 %v6061_v40  ;;  %v6070_v59 = vld [vmem:[%s6365_s14 + $0xfc] ss:$0 sps:$4 sm:$0xff]  }
 0x289   : > { %4043 = vmatprep.subr.bf16.mxu1 %v6066_v28  ;;  %5735 = vmatmul.mubr.msk.bf16.gmra.mrb[208].mxu1 %vm888_vm1, %v6069_v37  ;;  %v5040_v37 = vld [vmem:[%s7420_s4] ss:$0 sm:$0xff] }
 0x28a   : > { %v7187_v58 = vpack.c.bf16 %v2811_v60, %v2809_v36  ;;  %v2812_v57 = vmax.f32 %v2770_v50, 0.0  ;;  %5738 = vmatprep.mubr.msk.bf16.mxu1 %vm6130_vm0, %v6129_v1 }
 0x28b   : > { %v2627_v43 = vpop.f32.mrb[180].mxu1  ;;  %v2137_v10 = vpop.f32.mrb[180].mxu0 }
 0x28c   : > { %v7199_v16 = vpack.c.bf16 %v2812_v57, %v2810_v56  ;;  %v2722_v45 = vadd.f32 %v2627_v43, %v7083_v21  ;;  %v5708_v22 = vpop.f32.mrb[181].mxu1  ;;  %v5632_v27 = vpop.f32.mrb[181].mxu0  ;;  %4044 = vmatpush1.bf16.msra.mxu1 %v6064_v11  ;;  %v6054_v43 = vld [vmem:[%s7419_s3 + $0x48] sm:$0xff]  }
 0x28d   : > { %v2630_v38 = vpop.f32.mrb[182].mxu1  ;;  %v2139_v2 = vpop.f32.mrb[182].mxu0 }
 0x28e   : > { %v2771_v35 = vadd.f32 %v7004_v3, %v2722_v45  ;;  %v2723_v21 = vadd.f32 %v2630_v38, %v7089_v41  ;;  %v5709_v49 = vpop.f32.mrb[183].mxu1  ;;  %v5633_v33 = vpop.f32.mrb[183].mxu0 }
 0x28f   : > { %v6131_v49 = vmov 0  }
 0x290   : > { %v2813_v5 = vmax.f32 %v2771_v35, 0.0  ;;  %v2772_v34 = vadd.f32 %v7004_v3, %v2723_v21  ;;  %v6055_v21 = vld [vmem:[%s7419_s3 + $0x50] sm:$0xff]  }
 0x291   : > { %5739 = vmatmul.mubr.msk.bf16.gmra.mrb[212].mxu1 %vm888_vm1, %v6070_v59  ;;  %v6079_v59 = vld [vmem:[%s7421_s5 + $0x44] ss:$8 sps:$4 sm:$0xff]  }
 0x292   : > { %v7215_v47 = vpack.c.bf16 %v2813_v5, %v2811_v60  ;;  %v2814_v44 = vmax.f32 %v2772_v34, 0.0  ;;  %5775 = vmatmul.mubr.msk.bf16.vlgmr.msra.gmra.mrb[184].mxu0 %vm2914_vm2, %v7157_v61  ;;  %4073 = vmatprep.mubr.bf16.mxu1 %v6131_v49 }
 0x293   : > { %v2635_v41 = vpop.f32.mrb[184].mxu1  ;;  %5779 = vmatpush3.bf16.msra.mxu0 %v6051_v18  ;;  %5780 = vmatprep.mubr.msk.bf16.mxu0 %vm2914_vm2, %v7061_v30  ;;  %v6053_v30 = vld [vmem:[%s7419_s3 + $0x40] sm:$0xff]  }
 0x294   : > { %v7221_v48 = vpack.c.bf16 %v2814_v44, %v2812_v57  ;;  %v5712_v23 = vpop.f32.mrb[185].mxu1  ;;  %5784 = vmatprep.subr.bf16.mxu0 %v6052_v20 }
 0x295   : > { %v2638_v19 = vpop.f32.mrb[186].mxu1 }
 0x296   : > { %v2725_v12 = vadd.f32 %v2638_v19, %v7103_v32  ;;  %v5713_v46 = vpop.f32.mrb[187].mxu1 }
 0x298   : > { %v2774_v9 = vadd.f32 %v7004_v3, %v2725_v12 }
 0x29a   : > { %v2816_v4 = vmax.f32 %v2774_v9, 0.0 }
 0x29b   : > { %v2643_v6 = vpop.f32.mrb[188].mxu1 }
 0x29c   : > { %v2726_v18 = vadd.f32 %v2643_v6, %v7117_v62  ;;  %v5716_v8 = vpop.f32.mrb[189].mxu1 }
 0x29d   : > { %v2646_v53 = vpop.f32.mrb[190].mxu1 }
 0x29e   : > { %v2727_v32 = vadd.f32 %v2646_v53, %v7120_v63  ;;  %5781 = vmatmul.mubr.msk.bf16.vlgmr.msra.gmra.mrb[184].mxu0 %vm2914_vm2, %v7159_v17  ;;  %v5717_v14 = vpop.f32.mrb[191].mxu1  ;;  %v2775_v1 = vadd.f32 %v7004_v3, %v2726_v18 }
 0x29f   : > { %5785 = vmatpush3.bf16.msra.mxu0 %v6052_v20  ;;  %5786 = vmatprep.mubr.msk.bf16.mxu0 %vm2914_vm2, %v7071_v13  ;;  %v6074_v14 = vld [vmem:[%s7421_s5 + $0x10] ss:$8 sps:$4 sm:$0xff]  }
 0x2a0   : > { %v2776_v62 = vadd.f32 %v7004_v3, %v2727_v32  ;;  %5790 = vmatprep.subr.bf16.mxu0 %v6053_v30  ;;  %v2817_v40 = vmax.f32 %v2775_v1, 0.0  ;;  %v6076_v32 = vld [vmem:[%s7421_s5 + $0x14] ss:$8 sps:$4 sm:$0xff]  }
 0x2a1   : > { %v6082_v1 = vld [vmem:[%s7421_s5 + $0x54] ss:$8 sps:$4 sm:$0xff]  }
 0x2a2   : > { %v2818_v0 = vmax.f32 %v2776_v62, 0.0 }
 0x2a3   : > { %v2651_v54 = vpop.f32.mrb[192].mxu1 }
 0x2a4   : > { %v5116_v36 = vpack.c.bf16 %v2818_v0, %v2816_v4  ;;  %v2728_v63 = vadd.f32 %v2651_v54, %v7131_v31  ;;  %v5720_v60 = vpop.f32.mrb[193].mxu1  ;;  %v6077_v4 = vld [vmem:[%s7421_s5 + $0x40] ss:$8 sps:$4 sm:$0xff]  }
 0x2a5   : > { %v2654_v50 = vpop.f32.mrb[194].mxu1  ;;  %v6085_v60 = vld [vmem:[%s7421_s5 + $0x64] ss:$8 sps:$4 sm:$0xff]  }
 0x2a6   : > { %v2777_v56 = vadd.f32 %v7004_v3, %v2728_v63  ;;  %v2729_v13 = vadd.f32 %v2654_v50, %v7136_v51  ;;  %v5721_v57 = vpop.f32.mrb[195].mxu1  ;;  %v6083_v50 = vld [vmem:[%s7421_s5 + $0x60] ss:$8 sps:$4 sm:$0xff]  }
 0x2a7   : > { %v6088_v57 = vld [vmem:[%s7421_s5 + $0x74] ss:$8 sps:$4 sm:$0xff]  }
 0x2a8   : > { %v2819_v7 = vmax.f32 %v2777_v56, 0.0  ;;  %v2778_v39 = vadd.f32 %v7004_v3, %v2729_v13 }
 0x2aa   : > { %v5117_v10 = vpack.c.bf16 %v2819_v7, %v2817_v40  ;;  %v2820_v28 = vmax.f32 %v2778_v39, 0.0  ;;  %5787 = vmatmul.mubr.msk.bf16.vlgmr.msra.gmra.mrb[184].mxu0 %vm2914_vm2, %v7166_v24  ;;  %v6086_v40 = vld [vmem:[%s7421_s5 + $0x70] ss:$8 sps:$4 sm:$0xff]  }
 0x2ab   : > { %v2659_v31 = vpop.f32.mrb[196].mxu1  ;;  %5791 = vmatpush3.bf16.msra.mxu0 %v6053_v30  ;;  %5792 = vmatprep.mubr.msk.bf16.mxu0 %vm2914_vm2, %v7093_v15  ;;  %v6056_v15 = vld [vmem:[%s7419_s3 + $0x58] sm:$0xff]   ;;  %v6071_v30 = vld [vmem:[%s7421_s5] ss:$8 sps:$4 sm:$0xff]  }
 0x2ac   : > { %v5118_v51 = vpack.c.bf16 %v2820_v28, %v2818_v0  ;;  %v2730_v45 = vadd.f32 %v2659_v31, %v7144_v52  ;;  %5796 = vmatprep.subr.bf16.mxu0 %v6054_v43  ;;  %v5724_v22 = vpop.f32.mrb[197].mxu1  ;;  %v6091_v28 = vld [vmem:[%s7423_s7 + $0x48] sm:$0xff]  }
 0x2ad   : > { %v2662_v27 = vpop.f32.mrb[198].mxu1  ;;  %v6092_v31 = vld [vmem:[%s7423_s7 + $0x8] sm:$0xff]   ;;  %v6095_v22 = vld [vmem:[%s7423_s7 + $0x58] sm:$0xff]  }
 0x2ae   : > { %v2779_v38 = vadd.f32 %v7004_v3, %v2730_v45  ;;  %v5725_v2 = vpop.f32.mrb[199].mxu1  ;;  %v6057_v3 = vld [vmem:[%s7419_s3 + $0x60] sm:$0xff]   ;;  %v6094_v45 = vld [vmem:[%s7423_s7 + $0x10] sm:$0xff]   ;;  %v6096_v27 = vld [vmem:[%s7423_s7 + $0x18] sm:$0xff]  }
 0x2af   : > { %v6098_v2 = vld [vmem:[%s7423_s7 + $0x20] sm:$0xff]  }
 0x2b0   : > { %v2821_v11 = vmax.f32 %v2779_v38, 0.0  ;;  %v6097_v38 = vld [vmem:[%s7423_s7 + $0x60] sm:$0xff]  }
 0x2b2   : > { %v5119_v35 = vpack.c.bf16 %v2821_v11, %v2819_v7  ;;  %v6099_v11 = vld [vmem:[%s7423_s7 + $0x68] sm:$0xff]  }
 0x2b6   : > { %5793 = vmatmul.mubr.msk.bf16.vlgmr.msra.gmra.mrb[184].mxu0 %vm2914_vm2, %v7187_v58 }
 0x2b7   : > { %5797 = vmatpush3.bf16.msra.mxu0 %v6054_v43  ;;  %5798 = vmatprep.mubr.msk.bf16.mxu0 %vm2914_vm2, %v7095_v25  ;;  %v6058_v25 = vld [vmem:[%s7419_s3 + $0x68] sm:$0xff]   ;;  %v6089_v43 = vld [vmem:[%s7423_s7 + $0x40] sm:$0xff]  }
 0x2b8   : > { %5802 = vmatprep.subr.bf16.mxu0 %v6055_v21 }
 0x2c2   : > { %5799 = vmatmul.mubr.msk.bf16.vlgmr.msra.gmra.mrb[184].mxu0 %vm2914_vm2, %v7199_v16  ;;  %v6073_v16 = vld [vmem:[%s7421_s5 + $0x4] ss:$8 sps:$4 sm:$0xff]  }
 0x2c3   : > { %5803 = vmatpush3.bf16.msra.mxu0 %v6055_v21  ;;  %5804 = vmatprep.mubr.msk.bf16.mxu0 %vm2914_vm2, %v7112_v29  ;;  %v6059_v29 = vld [vmem:[%s7419_s3 + $0x70] sm:$0xff]  }
 0x2c4   : > { %5808 = vmatprep.subr.bf16.mxu0 %v6056_v15  ;;  %4105 = vmatprep.subr.bf16.mxu1 %v6073_v16  ;;  %v6101_v21 = vld [vmem:[%s7423_s7 + $0x70] sm:$0xff]  }
 0x2ce   : > { %5805 = vmatmul.mubr.msk.bf16.vlgmr.msra.gmra.mrb[184].mxu0 %vm2914_vm2, %v7215_v47 }
 0x2cf   : > { %5809 = vmatpush3.bf16.msra.mxu0 %v6056_v15  ;;  %5810 = vmatprep.mubr.msk.bf16.mxu0 %vm2914_vm2, %v7114_v55  ;;  %v6060_v55 = vld [vmem:[%s7419_s3 + $0x78] sm:$0xff]   ;;  %v6102_v15 = vld [vmem:[%s7423_s7 + $0x30] sm:$0xff]  }
 0x2d0   : > { %5814 = vmatprep.subr.bf16.mxu0 %v6057_v3 }
 0x2da   : > { %5811 = vmatmul.mubr.msk.bf16.vlgmr.msra.gmra.mrb[184].mxu0 %vm2914_vm2, %v7221_v48 }
 0x2db   : > { %5815 = vmatpush3.bf16.msra.mxu0 %v6057_v3  ;;  %5816 = vmatprep.mubr.msk.bf16.mxu0 %vm2914_vm2, %v7141_v42  ;;  %v6103_v3 = vld [vmem:[%s7423_s7 + $0x78] sm:$0xff]  }
 0x2dc   : > { %5820 = vmatprep.subr.bf16.mxu0 %v6058_v25 }
 0x2e6   : > { %5817 = vmatmul.mubr.msk.bf16.vlgmr.msra.gmra.mrb[184].mxu0 %vm2914_vm2, %v5116_v36  ;;  %v6080_v36 = vld [vmem:[%s7421_s5 + $0x50] ss:$8 sps:$4 sm:$0xff]  }
 0x2e7   : > { %5821 = vmatpush3.bf16.msra.mxu0 %v6058_v25  ;;  %5822 = vmatprep.mubr.msk.bf16.mxu0 %vm2914_vm2, %v7157_v61  ;;  %v6104_v25 = vld [vmem:[%s7423_s7 + $0x38] sm:$0xff]  }
 0x2e8   : > { %5826 = vmatprep.subr.bf16.mxu0 %v6059_v29 }
 0x2f2   : > { %5823 = vmatmul.mubr.msk.bf16.vlgmr.msra.gmra.mrb[184].mxu0 %vm2914_vm2, %v5117_v10  ;;  %v6090_v10 = vld [vmem:[%s7423_s7] sm:$0xff]  }
 0x2f3   : > { %5827 = vmatpush3.bf16.msra.mxu0 %v6059_v29  ;;  %5828 = vmatprep.mubr.msk.bf16.mxu0 %vm2914_vm2, %v7159_v17 }
 0x2f4   : > { %5832 = vmatprep.subr.bf16.mxu0 %v6060_v55 }
 0x2fe   : > { %5829 = vmatmul.mubr.msk.bf16.vlgmr.msra.gmra.mrb[184].mxu0 %vm2914_vm2, %v5118_v51  ;;  %v6093_v51 = vld [vmem:[%s7423_s7 + $0x50] sm:$0xff]  }
 0x2ff   : > { %5833 = vmatpush3.bf16.msra.mxu0 %v6060_v55  ;;  %5834 = vmatprep.mubr.msk.bf16.mxu0 %vm2914_vm2, %v7166_v24 }
 0x30a   : > { %5835 = vmatmul.mubr.msk.bf16.vlgmr.msra.gmra.mrb[184].mxu0 %vm2914_vm2, %v5119_v35  ;;  %v6100_v35 = vld [vmem:[%s7423_s7 + $0x28] sm:$0xff]  }
 0x349   : > { %v2667_v42 = vpop.f32.mrb[200].mxu1 }
 0x34a   : > { %v5728_v52 = vpop.f32.mrb[201].mxu1 }
 0x34b   : > { %v2669_v61 = vpop.f32.mrb[202].mxu1 }
 0x34c   : > { %v5729_v58 = vpop.f32.mrb[203].mxu1 }
 0x352   : > { %v2673_v17 = vpop.f32.mrb[204].mxu1 }
 0x353   : > { %v5732_v33 = vpop.f32.mrb[205].mxu1 }
 0x354   : > { %v2675_v5 = vpop.f32.mrb[206].mxu1 }
 0x355   : > { %v5733_v34 = vpop.f32.mrb[207].mxu1  ;;  %v4290_v5 = vlaneseq }
 0x357   : > { %v4291_v34 = vshrl.u32 %v4290_v5, 7 }
 0x35c   : > { %v2679_v20 = vpop.f32.mrb[208].mxu1 }
 0x35d   : > { %v5736_v26 = vpop.f32.mrb[209].mxu1 }
 0x35e   : > { %v2681_v24 = vpop.f32.mrb[210].mxu1 }
 0x35f   : > { %v5737_v47 = vpop.f32.mrb[211].mxu1 }
 0x364   : > { %v2685_v44 = vpop.f32.mrb[212].mxu1 }
 0x365   : > { %v5740_v41 = vpop.f32.mrb[213].mxu1 }
 0x366   : > { %v2687_v48 = vpop.f32.mrb[214].mxu1 }
 0x367   : > { %v5741_v23 = vpop.f32.mrb[215].mxu1  ;;  %v4292_v48 = vsub.s32 0, %v4291_v34 }
 0x368   : > { %v4288_v23 = vld [vmem:[%s7422_s6] sm:$0x3] }
 0x3dd   : > { %v5836_v19 = vpop.f32.mrb[184].mxu0 }
 0x3de   : > { %v3962_v12 = vpop.f32.mrb[185].mxu0  ;;  %v3990_v0 = vadd.f32 %v5836_v19, %v5040_v37  ;;  %v4296_v19 = vsub.s32 1, %v4291_v34 }
 0x3df   : > { %v5837_v46 = vpop.f32.mrb[186].mxu0  ;;  %v3988_v53 = vadd.f32 %v5040_v37, %v3962_v12  ;;  %v4293_v12 = vrot.slane %v4288_v23, %v4292_v48 }
 0x3e0   : > { %v3965_v6 = vpop.f32.mrb[187].mxu0  ;;  %v3994_v63 = vmax.f32 %v3990_v0, 0.0  ;;  %v3991_v13 = vadd.f32 %v5837_v46, %v5040_v37 }
 0x3e1   : > { %v3989_v18 = vadd.f32 %v5040_v37, %v3965_v6  ;;  %v3992_v62 = vmax.f32 %v3988_v53, 0.0  ;;  %v4297_v37 = vrot.slane %v4288_v23, %v4296_v19 }
 0x3e2   : > { %v5122_v56 = vpack.c.bf16 %v3994_v63, %v3994_v63  ;;  %v3995_v7 = vmax.f32 %v3991_v13, 0.0 }
 0x3e3   : > { %v3993_v8 = vmax.f32 %v3989_v18, 0.0  ;;  %v5120_v54 = vpack.c.bf16 %v3992_v62, %v3992_v62 }
 0x3e4   : > { %v5123_v39 = vpack.c.bf16 %v3995_v7, %v3995_v7 }
 0x3e5   : > { %v5121_v9 = vpack.c.bf16 %v3993_v8, %v3993_v8 }
 0x3e7   : > { %5053 = vmatmul.mubr.msk.bf16.vlgmr.msra.gmra.mrb[216].mxu1 %vm4037_vm3, %v5121_v9 }
 0x3e8   : > { %4106 = vmatpush1.bf16.msra.mxu1 %v6071_v30  ;;  %4137 = vmatprep.mubr.bf16.mxu1 %v6131_v49 }
 0x3e9   : > { %4107 = vmatprep.subr.bf16.mxu1 %v6076_v32 }
 0x3ec   : > { %4108 = vmatpush1.bf16.msra.mxu1 %v6074_v14 }
 0x3ed   : > { %4174 = vmatprep.subr.bf16.mxu1 %v6079_v59 }
 0x3ef   : > { %5058 = vmatmul.mubr.msk.bf16.vlgmr.msra.gmra.mrb[220].mxu1 %vm4037_vm3, %v5120_v54  ;;  %v5077_v54 = vld [vmem:[%s7424_s8] ss:$0 sm:$0xff] }
 0x3f0   : > { %4175 = vmatpush1.bf16.msra.mxu1 %v6077_v4  ;;  %4206 = vmatprep.mubr.bf16.mxu1 %v6131_v49 }
 0x3f1   : > { %4176 = vmatprep.subr.bf16.mxu1 %v6082_v1 }
 0x3f4   : > { %4177 = vmatpush1.bf16.msra.mxu1 %v6080_v36 }
 0x3f5   : > { %4245 = vmatprep.subr.bf16.mxu1 %v6085_v60 }
 0x3f7   : > { %5067 = vmatmul.mubr.msk.bf16.vlgmr.msra.gmra.mrb[224].mxu1 %vm4037_vm3, %v5122_v56 }
 0x3f8   : > { %4246 = vmatpush1.bf16.msra.mxu1 %v6083_v50  ;;  %4277 = vmatprep.mubr.bf16.mxu1 %v6131_v49 }
 0x3f9   : > { %4247 = vmatprep.subr.bf16.mxu1 %v6088_v57 }
 0x3fc   : > { %4248 = vmatpush1.bf16.msra.mxu1 %v6086_v40 }
 0x3fd   : > { %5288 = vmatprep.subr.bf16.mxu1 %v6089_v43 }
 0x3ff   : > { %5076 = vmatmul.mubr.msk.bf16.vlgmr.msra.gmra.mrb[228].mxu1 %vm4037_vm3, %v5123_v39 }
 0x400   : > { %5289 = vmatpush3.bf16.msra.mxu1 %v6090_v10 }
 0x401   : > { %5290 = vmatprep.subr.bf16.mxu1 %v6091_v28 }
 0x404   : > { %5291 = vmatpush3.bf16.msra.mxu1 %v6092_v31 }
 0x405   : > { %5292 = vmatprep.subr.bf16.mxu1 %v6093_v51 }
 0x408   : > { %5293 = vmatpush3.bf16.msra.mxu1 %v6094_v45 }
 0x409   : > { %5294 = vmatprep.subr.bf16.mxu1 %v6095_v22 }
 0x40c   : > { %5295 = vmatpush3.bf16.msra.mxu1 %v6096_v27 }
 0x40d   : > { %5296 = vmatprep.subr.bf16.mxu1 %v6097_v38 }
 0x410   : > { %5297 = vmatpush3.bf16.msra.mxu1 %v6098_v2 }
 0x411   : > { %5298 = vmatprep.subr.bf16.mxu1 %v6099_v11 }
 0x414   : > { %5299 = vmatpush3.bf16.msra.mxu1 %v6100_v35 }
 0x415   : > { %5300 = vmatprep.subr.bf16.mxu1 %v6101_v21 }
 0x418   : > { %5301 = vmatpush3.bf16.msra.mxu1 %v6102_v15 }
 0x419   : > { %5302 = vmatprep.subr.bf16.mxu1 %v6103_v3 }
 0x41c   : > { %5303 = vmatpush3.bf16.msra.mxu1 %v6104_v25 }
 0x4ba   : > { %v4075_v29 = vpop.f32.mrb[216].mxu1 }
 0x4bb   : > { %v4077_v55 = vpop.f32.mrb[217].mxu1 }
 0x4bc   : > { %v4079_v42 = vpop.f32.mrb[218].mxu1 }
 0x4bd   : > { %v4080_v52 = vpop.f32.mrb[219].mxu1 }
 0x4c2   : > { %v4139_v61 = vpop.f32.mrb[220].mxu1 }
 0x4c3   : > { %v4140_v58 = vadd.f32 %v4139_v61, %v4075_v29  ;;  %v4141_v16 = vpop.f32.mrb[221].mxu1 }
 0x4c4   : > { %v4142_v49 = vadd.f32 %v4141_v16, %v4077_v55  ;;  %v4143_v17 = vpop.f32.mrb[222].mxu1 }
 0x4c5   : > { %v4144_v33 = vpop.f32.mrb[223].mxu1 }
 0x4ca   : > { %v4208_v20 = vpop.f32.mrb[224].mxu1 }
 0x4cb   : > { %v4215_v26 = vadd.f32 %v4208_v20, %v4140_v58  ;;  %v4210_v24 = vpop.f32.mrb[225].mxu1 }
 0x4cc   : > { %v4216_v47 = vadd.f32 %v4210_v24, %v4142_v49  ;;  %v4212_v44 = vpop.f32.mrb[226].mxu1 }
 0x4cd   : > { %v4213_v41 = vpop.f32.mrb[227].mxu1 }
 0x4d2   : > { %v4279_v46 = vpop.f32.mrb[228].mxu1 }
 0x4d3   : > { %v4286_v6 = vadd.f32 %v4279_v46, %v4215_v26  ;;  %v4281_v18 = vpop.f32.mrb[229].mxu1 }
 0x4d4   : > { %v4287_v8 = vadd.f32 %v4281_v18, %v4216_v47  ;;  %v4283_v30 = vpop.f32.mrb[230].mxu1 }
 0x4d5   : > { %v4300_v53 = vadd.f32 %v4293_v12, %v4286_v6  ;;  %v4284_v9 = vpop.f32.mrb[231].mxu1 }
 0x4d6   : > { %v4301_v32 = vadd.f32 %v4297_v37, %v4287_v8 }
 0x4d7   : > { %v4302_v14 = vmax.f32 %v4300_v53, 0.0 }
 0x4d8   : > { %v4303_v62 = vmax.f32 %v4301_v32, 0.0 }
 0x4d9   : > { %v4304_v4 = vpack.c.bf16 %v4302_v14, %v4302_v14 }
 0x4da   : > { %v4305_v59 = vpack.c.bf16 %v4303_v62, %v4303_v62 }
 0x4dc   : > { %4473 = vmatprep.mubr.bf16.mxu1 %v4305_v59 }
 0x4dd   : > { %4474 = vmatmul.mubr.bf16.vlgmr.msra.gmra.mrb[232].mxu1 %v4304_v4 }
 0x5b0   : > { %v5304_v0 = vpop.f32.mrb[232].mxu1 }
 0x5b1   : > { %v5305_v1 = vpop.f32.mrb[233].mxu1 }
 0x5b2   : > { %v5306_v36 = vadd.f32 %v5305_v1, %v5304_v0  ;;  %v5307_v63 = vpop.f32.mrb[234].mxu1 }
 0x5b3   : > { %v5308_v60 = vpop.f32.mrb[235].mxu1 }
 0x5b4   : > { %v4476_v50 = vadd.f32 %v5306_v36, %v5077_v54 }
 0x5b6   : > { %4481 = vst [vmem:[%s623_s25] sm:$0xff] %v4476_v50 }
 0x5b7 PF: > { %p16_p9 = scmp.ge.s32.totalorder %s6199_s13, 4   ;;  %s7426_s30 = smov %s6123_s10 }
 0x5b8   : > { %s7427_s10 = smov %s6208_s16  ;;  %s7428_s11 = smov %s6199_s13 }
 0x5b9   :  { %18 = sbr.rel (!%p16_p9) target bundleno = 2 (0x2), region = 156 }

</bundles_post_ra>
